<compile_context>
chip_gen: v6e
topology: v6e:2x2x1
jax: 0.10.0
libtpu: 0.0.40
codegen_flags: <defaults>
</compile_context>

<pallas_src>
import functools
import math

import jax
import jax.numpy as jnp
from jax.experimental import pallas as pl
from jax.experimental.pallas import tpu as pltpu


def _pet_kernel(x_ref, pbias_ref, smask_ref,
                gn1_w_ref, gn1_b_ref, gn2_w_ref, gn2_b_ref,
                wq_ref, bq_ref, wk_ref, bk_ref, wv_ref, bv_ref,
                wo_ref, bo_ref, w1_ref, b1_ref, w2_ref, b2_ref,
                ls1_ref, ls2_ref, out_ref,
                *, num_heads, layer_scale, eps=1e-5):
    enc = x_ref[...]                       # (BB, T, D) f32
    bb, t, d = enc.shape
    hd = d // num_heads
    n_inv = 1.0 / float(t * d)

    def group_norm(z, w_ref, b_ref):
        # GroupNorm(1, nMaxJet): per-sample stats over all (T, D) elements,
        # per-jet affine (gamma/beta of shape (T, 1)) broadcast over D.
        # One-pass sum / sum-of-squares; chained single-axis reductions keep
        # the lowering simple (XLU lane reduce, then sublane reduce).
        s1 = jnp.sum(jnp.sum(z, axis=2, keepdims=True), axis=1, keepdims=True)
        s2 = jnp.sum(jnp.sum(z * z, axis=2, keepdims=True), axis=1, keepdims=True)
        mu = s1 * n_inv
        var = jnp.maximum(s2 * n_inv - mu * mu, 0.0)
        return (z - mu) * jax.lax.rsqrt(var + eps) * w_ref[...] + b_ref[...]

    x1 = group_norm(enc, gn1_w_ref, gn1_b_ref)               # (BB, T, D)

    # ---- QKV projections on the flattened (BB*T, D) slab (bf16 MXU, f32 accum).
    x1f = x1.reshape(bb * t, d).astype(jnp.bfloat16)
    scale = 1.0 / math.sqrt(hd)
    q = (jnp.dot(x1f, wq_ref[...],
                 preferred_element_type=jnp.float32) + bq_ref[...]) * scale
    k = jnp.dot(x1f, wk_ref[...],
                preferred_element_type=jnp.float32) + bk_ref[...]
    v = jnp.dot(x1f, wv_ref[...],
                preferred_element_type=jnp.float32) + bv_ref[...]
    q3 = q.reshape(bb, t, d)
    k3 = k.reshape(bb, t, d)
    v3 = v.reshape(bb, t, d).astype(jnp.bfloat16)

    key_bias = pbias_ref[...]              # (BB, 1, T): 0 for valid keys, -1e9 for padded
    wo = wo_ref[...]                       # (D, D) bf16, VMEM-resident

    # ---- Multi-head self-attention, batched over the BB samples per head.
    # Per-head contexts are folded straight into the output projection
    # (updates = sum_h ctx_h @ Wo[h*hd:(h+1)*hd]), avoiding a lane-axis concat.
    updates_f = jnp.zeros((bb * t, d), jnp.float32)
    for h in range(num_heads):             # static unroll over heads
        sl = slice(h * hd, (h + 1) * hd)
        qh = q3[:, :, sl].astype(jnp.bfloat16)
        kh = k3[:, :, sl].astype(jnp.bfloat16)
        vh = v3[:, :, sl]
        s = jnp.einsum('bqd,bkd->bqk', qh, kh,
                       preferred_element_type=jnp.float32) + key_bias
        s = s - jnp.max(s, axis=-1, keepdims=True)
        p = jnp.exp(s)
        p = p * pl.reciprocal(jnp.sum(p, axis=-1, keepdims=True), approx=True)
        ctx = jnp.einsum('bqk,bkd->bqd', p.astype(jnp.bfloat16), vh,
                         preferred_element_type=jnp.float32)
        updates_f = updates_f + jnp.dot(
            ctx.reshape(bb * t, hd).astype(jnp.bfloat16), wo[sl, :],
            preferred_element_type=jnp.float32)
    updates = (updates_f + bo_ref[...]).reshape(bb, t, d)

    smask = smask_ref[...]                 # (BB, T, 1) sequence mask (1 valid / 0 pad)
    if layer_scale:
        updates = (updates * ls1_ref[...]) * smask

    # StochasticDepth / Dropout: identity (eval mode).
    x2 = updates + enc

    if layer_scale:
        # Faithful reference quirk: layer_scale_fn2 is applied to `updates`, so the
        # entire GN2 + MLP result is dead compute -> skip it at trace time.
        x3 = (updates * ls2_ref[...]) * smask
    else:
        xn = group_norm(x2, gn2_w_ref, gn2_b_ref)
        xnf = xn.reshape(bb * t, d).astype(jnp.bfloat16)
        h1 = jnp.dot(xnf, w1_ref[...],
                     preferred_element_type=jnp.float32) + b1_ref[...]
        # tanh-GELU routes the transcendental to the EUP; close approximation of
        # the exact-erf nn.GELU() in the reference.
        h1 = jax.nn.gelu(h1, approximate=True)
        x3 = (jnp.dot(h1.astype(jnp.bfloat16), w2_ref[...],
                      preferred_element_type=jnp.float32) + b2_ref[...]).reshape(bb, t, d)

    out_ref[...] = (x3 + x2) * smask


def _pick_block_batch(bsz, t_len, target_rows=256):
    """Largest divisor BB of bsz with BB*T <= target_rows (MXU-friendly M), keeping the
    grid length >= 2 when possible so both TensorCores get work under megacore."""
    bb_cap = max(1, target_rows // max(t_len, 1))
    if bsz >= 2:
        bb_cap = min(bb_cap, bsz // 2)
    bb = 1
    for cand in range(1, bb_cap + 1):
        if bsz % cand == 0:
            bb = cand
    return bb


# Indices of the matmul weight matrices inside the params list (cast to bf16 once).
_BF16_PARAM_IDX = (4, 6, 8, 10, 12, 14)   # wq, wk, wv, wo, w1, w2


def init_params(key, t, d, layer_scale_init=1e-3):
    ks = jax.random.split(key, 16)

    def lin(k, shape, fan_in):
        return jax.random.normal(k, shape, jnp.float32) * (1.0 / math.sqrt(fan_in))

    gn1_w = 1.0 + 0.1 * jax.random.normal(ks[0], (t, 1), jnp.float32)
    gn1_b = 0.1 * jax.random.normal(ks[1], (t, 1), jnp.float32)
    gn2_w = 1.0 + 0.1 * jax.random.normal(ks[2], (t, 1), jnp.float32)
    gn2_b = 0.1 * jax.random.normal(ks[3], (t, 1), jnp.float32)
    wq = lin(ks[4], (d, d), d);   bq = 0.01 * jax.random.normal(ks[5], (1, d), jnp.float32)
    wk = lin(ks[6], (d, d), d);   bk = 0.01 * jax.random.normal(ks[7], (1, d), jnp.float32)
    wv = lin(ks[8], (d, d), d);   bv = 0.01 * jax.random.normal(ks[9], (1, d), jnp.float32)
    wo = lin(ks[10], (d, d), d);  bo = 0.01 * jax.random.normal(ks[11], (1, d), jnp.float32)
    w1 = lin(ks[12], (d, 2 * d), d);      b1 = 0.01 * jax.random.normal(ks[13], (1, 2 * d), jnp.float32)
    w2 = lin(ks[14], (2 * d, d), 2 * d);  b2 = 0.01 * jax.random.normal(ks[15], (1, d), jnp.float32)
    ls1 = jnp.full((1, d), layer_scale_init, jnp.float32)
    ls2 = jnp.full((1, d), layer_scale_init, jnp.float32)
    return [gn1_w, gn1_b, gn2_w, gn2_b,
            wq, bq, wk, bk, wv, bv, wo, bo,
            w1, b1, w2, b2, ls1, ls2]


def pet_transformer_block(x, padding_mask, sequence_mask, params, *,
                          num_heads, layer_scale=True, block_batch=None):
    """x: (T, B, D) f32; padding_mask: (B, T) bool (True = padded key);
    sequence_mask: (T, B, 1) f32/bool. Returns (T, B, D) f32."""
    t_len, bsz, d = x.shape
    assert d % num_heads == 0, "hidden_dim must be divisible by num_heads"

    enc = jnp.transpose(x, (1, 0, 2)).astype(jnp.float32)                        # (B, T, D)
    pbias = jnp.where(padding_mask, -1e9, 0.0).astype(jnp.float32)[:, None, :]   # (B, 1, T)
    smask = jnp.transpose(sequence_mask.astype(jnp.float32), (1, 0, 2))          # (B, T, 1)

    # Matmul weights are cast to bf16 once in the wrapper (f32 MXU accumulation in
    # the kernel); biases / GN affines / layer-scale gammas stay f32.
    params_dev = [p.astype(jnp.bfloat16) if i in _BF16_PARAM_IDX else p
                  for i, p in enumerate(params)]

    bb = block_batch if block_batch is not None else _pick_block_batch(bsz, t_len)
    assert bsz % bb == 0, "block_batch must divide the batch size"
    grid = (bsz // bb,)

    in_specs = [
        pl.BlockSpec((bb, t_len, d), lambda i: (i, 0, 0)),     # encoded block
        pl.BlockSpec((bb, 1, t_len), lambda i: (i, 0, 0)),     # key-padding additive bias
        pl.BlockSpec((bb, t_len, 1), lambda i: (i, 0, 0)),     # sequence mask
    ] + [pl.BlockSpec(p.shape, lambda i: (0, 0)) for p in params_dev]  # resident weights

    kernel = functools.partial(_pet_kernel, num_heads=num_heads,
                               layer_scale=layer_scale)

    out = pl.pallas_call(
        kernel,
        out_shape=jax.ShapeDtypeStruct((bsz, t_len, d), jnp.float32),
        grid=grid,
        in_specs=in_specs,
        out_specs=pl.BlockSpec((bb, t_len, d), lambda i: (i, 0, 0)),
        compiler_params=pltpu.CompilerParams(dimension_semantics=("parallel",)),
    )(enc, pbias, smask, *params_dev)

    return jnp.transpose(out, (1, 0, 2))                                          # (T, B, D)


def _pet_reference(x, padding_mask, sequence_mask, params, *, num_heads, layer_scale):
    """Pure-JAX f32 reference following the PyTorch forward (eval mode)."""
    (gn1_w, gn1_b, gn2_w, gn2_b,
     wq, bq, wk, bk, wv, bv, wo, bo,
     w1, b1, w2, b2, ls1, ls2) = params
    t_len, bsz, d = x.shape
    hd = d // num_heads

    enc = jnp.transpose(x, (1, 0, 2)).astype(jnp.float32)                 # (B, T, D)

    def gn(z, w, b):
        mu = jnp.mean(z, axis=(1, 2), keepdims=True)
        var = jnp.mean((z - mu) ** 2, axis=(1, 2), keepdims=True)
        return (z - mu) / jnp.sqrt(var + 1e-5) * w + b

    x1 = gn(enc, gn1_w, gn1_b)
    q = (x1 @ wq + bq).reshape(bsz, t_len, num_heads, hd)
    k = (x1 @ wk + bk).reshape(bsz, t_len, num_heads, hd)
    v = (x1 @ wv + bv).reshape(bsz, t_len, num_heads, hd)
    s = jnp.einsum('bqhd,bkhd->bhqk', q, k) / math.sqrt(hd)
    s = s + jnp.where(padding_mask, -1e9, 0.0)[:, None, None, :]
    p = jax.nn.softmax(s, axis=-1)
    ctx = jnp.einsum('bhqk,bkhd->bqhd', p, v).reshape(bsz, t_len, d)
    updates = ctx @ wo + bo

    smask = jnp.transpose(sequence_mask.astype(jnp.float32), (1, 0, 2))   # (B, T, 1)
    if layer_scale:
        updates = (updates * ls1) * smask
    x2 = updates + enc
    x3 = gn(x2, gn2_w, gn2_b)
    x3 = jax.nn.gelu(x3 @ w1 + b1, approximate=False) @ w2 + b2
    if layer_scale:
        x3 = (updates * ls2) * smask
    out = (x3 + x2) * smask
    return jnp.transpose(out, (1, 0, 2))


if __name__ == "__main__":
    # Small config: nMaxJet T=8, batch B=4, hidden_dim D=32, PET_num_heads=4.
    # (B=4 exercises the BB=2 batched grid path with a grid of length 2.)
    T, B, D, H = 8, 4, 32, 4
    key = jax.random.PRNGKey(0)
    k_x, k_p = jax.random.split(key)

    x = jax.random.normal(k_x, (T, B, D), jnp.float32)
    lengths = jnp.array([6, 5, 8, 3], dtype=jnp.int32)
    pos = jnp.arange(T, dtype=jnp.int32)
    padding_mask = pos[None, :] >= lengths[:, None]                    # (B, T) bool, True = pad
    sequence_mask = (~padding_mask).astype(jnp.float32).T[:, :, None]  # (T, B, 1)

    params = init_params(k_p, T, D, layer_scale_init=1e-3)

    for ls in (True, False):
        got = pet_transformer_block(x, padding_mask, sequence_mask, params,
                                    num_heads=H, layer_scale=ls)
        want = _pet_reference(x, padding_mask, sequence_mask, params,
                              num_heads=H, layer_scale=ls)
        jax.block_until_ready((got, want))
        assert got.shape == (T, B, D)
        assert bool(jnp.all(jnp.isfinite(got)))
        # Loose tolerance: kernel uses bf16 MXU operands, approx reciprocal and tanh-GELU.
        max_err = float(jnp.max(jnp.abs(got - want)))
        assert max_err < 0.25, f"layer_scale={ls}: max abs err {max_err}"

    print("KERNEL_OK")
</pallas_src>

<mosaic_0001>
module attributes {stable_mosaic.version = 11 : i64} {
  func.func @_pet_kernel(%arg0: i32, %arg1: memref<2x8x32xf32, #tpu.memory_space<vmem>>, %arg2: memref<2x1x8xf32, #tpu.memory_space<vmem>>, %arg3: memref<2x8x1xf32, #tpu.memory_space<vmem>>, %arg4: memref<8x1xf32, #tpu.memory_space<vmem>>, %arg5: memref<8x1xf32, #tpu.memory_space<vmem>>, %arg6: memref<8x1xf32, #tpu.memory_space<vmem>>, %arg7: memref<8x1xf32, #tpu.memory_space<vmem>>, %arg8: memref<32x32xbf16, #tpu.memory_space<vmem>>, %arg9: memref<1x32xf32, #tpu.memory_space<vmem>>, %arg10: memref<32x32xbf16, #tpu.memory_space<vmem>>, %arg11: memref<1x32xf32, #tpu.memory_space<vmem>>, %arg12: memref<32x32xbf16, #tpu.memory_space<vmem>>, %arg13: memref<1x32xf32, #tpu.memory_space<vmem>>, %arg14: memref<32x32xbf16, #tpu.memory_space<vmem>>, %arg15: memref<1x32xf32, #tpu.memory_space<vmem>>, %arg16: memref<32x64xbf16, #tpu.memory_space<vmem>>, %arg17: memref<1x64xf32, #tpu.memory_space<vmem>>, %arg18: memref<64x32xbf16, #tpu.memory_space<vmem>>, %arg19: memref<1x32xf32, #tpu.memory_space<vmem>>, %arg20: memref<1x32xf32, #tpu.memory_space<vmem>>, %arg21: memref<1x32xf32, #tpu.memory_space<vmem>>, %arg22: memref<2x8x32xf32, #tpu.memory_space<vmem>>) attributes {dimension_semantics = [#tpu.dimension_semantics<parallel>], iteration_bounds = array<i64: 2>, scalar_prefetch = 0 : i64, scratch_operands = 0 : i64, tpu.core_type = #tpu.core_type<tc>, window_params = [{transform_indices = @transform_0, window_bounds = array<i64: 2, 8, 32>}, {transform_indices = @transform_1, window_bounds = array<i64: 2, 1, 8>}, {transform_indices = @transform_2, window_bounds = array<i64: 2, 8, 1>}, {pipeline_mode = #tpu.pipeline_mode<synchronous>, transform_indices = @transform_3, window_bounds = array<i64: 8, 1>}, {pipeline_mode = #tpu.pipeline_mode<synchronous>, transform_indices = @transform_4, window_bounds = array<i64: 8, 1>}, {pipeline_mode = #tpu.pipeline_mode<synchronous>, transform_indices = @transform_5, window_bounds = array<i64: 8, 1>}, {pipeline_mode = #tpu.pipeline_mode<synchronous>, transform_indices = @transform_6, window_bounds = array<i64: 8, 1>}, {pipeline_mode = #tpu.pipeline_mode<synchronous>, transform_indices = @transform_7, window_bounds = array<i64: 32, 32>}, {pipeline_mode = #tpu.pipeline_mode<synchronous>, transform_indices = @transform_8, window_bounds = array<i64: 1, 32>}, {pipeline_mode = #tpu.pipeline_mode<synchronous>, transform_indices = @transform_9, window_bounds = array<i64: 32, 32>}, {pipeline_mode = #tpu.pipeline_mode<synchronous>, transform_indices = @transform_10, window_bounds = array<i64: 1, 32>}, {pipeline_mode = #tpu.pipeline_mode<synchronous>, transform_indices = @transform_11, window_bounds = array<i64: 32, 32>}, {pipeline_mode = #tpu.pipeline_mode<synchronous>, transform_indices = @transform_12, window_bounds = array<i64: 1, 32>}, {pipeline_mode = #tpu.pipeline_mode<synchronous>, transform_indices = @transform_13, window_bounds = array<i64: 32, 32>}, {pipeline_mode = #tpu.pipeline_mode<synchronous>, transform_indices = @transform_14, window_bounds = array<i64: 1, 32>}, {pipeline_mode = #tpu.pipeline_mode<synchronous>, transform_indices = @transform_15, window_bounds = array<i64: 32, 64>}, {pipeline_mode = #tpu.pipeline_mode<synchronous>, transform_indices = @transform_16, window_bounds = array<i64: 1, 64>}, {pipeline_mode = #tpu.pipeline_mode<synchronous>, transform_indices = @transform_17, window_bounds = array<i64: 64, 32>}, {pipeline_mode = #tpu.pipeline_mode<synchronous>, transform_indices = @transform_18, window_bounds = array<i64: 1, 32>}, {pipeline_mode = #tpu.pipeline_mode<synchronous>, transform_indices = @transform_19, window_bounds = array<i64: 1, 32>}, {pipeline_mode = #tpu.pipeline_mode<synchronous>, transform_indices = @transform_20, window_bounds = array<i64: 1, 32>}, {transform_indices = @transform_21, window_bounds = array<i64: 2, 8, 32>}]} {
    %c0 = arith.constant 0 : index
    %c0_0 = arith.constant 0 : index
    %c0_1 = arith.constant 0 : index
    %0 = vector.load %arg1[%c0, %c0_0, %c0_1] : memref<2x8x32xf32, #tpu.memory_space<vmem>>, vector<2x8x32xf32>
    %cst = arith.constant dense<0.000000e+00> : vector<2x8xf32>
    %1 = vector.multi_reduction <add>, %0, %cst [2] : vector<2x8x32xf32> to vector<2x8xf32>
    %2 = vector.shape_cast %1 : vector<2x8xf32> to vector<2x8x1xf32>
    %cst_2 = arith.constant dense<0.000000e+00> : vector<2x1xf32>
    %3 = vector.multi_reduction <add>, %2, %cst_2 [1] : vector<2x8x1xf32> to vector<2x1xf32>
    %4 = vector.shape_cast %3 : vector<2x1xf32> to vector<2x1x1xf32>
    %5 = arith.mulf %0, %0 : vector<2x8x32xf32>
    %cst_3 = arith.constant dense<0.000000e+00> : vector<2x8xf32>
    %6 = vector.multi_reduction <add>, %5, %cst_3 [2] : vector<2x8x32xf32> to vector<2x8xf32>
    %7 = vector.shape_cast %6 : vector<2x8xf32> to vector<2x8x1xf32>
    %cst_4 = arith.constant dense<0.000000e+00> : vector<2x1xf32>
    %8 = vector.multi_reduction <add>, %7, %cst_4 [1] : vector<2x8x1xf32> to vector<2x1xf32>
    %9 = vector.shape_cast %8 : vector<2x1xf32> to vector<2x1x1xf32>
    %cst_5 = arith.constant 3.906250e-03 : f32
    %10 = vector.broadcast %cst_5 : f32 to vector<2x1x1xf32>
    %11 = arith.mulf %4, %10 : vector<2x1x1xf32>
    %cst_6 = arith.constant 3.906250e-03 : f32
    %12 = vector.broadcast %cst_6 : f32 to vector<2x1x1xf32>
    %13 = arith.mulf %9, %12 : vector<2x1x1xf32>
    %14 = arith.mulf %11, %11 : vector<2x1x1xf32>
    %15 = arith.subf %13, %14 : vector<2x1x1xf32>
    %cst_7 = arith.constant 0.000000e+00 : f32
    %16 = vector.broadcast %cst_7 : f32 to vector<2x1x1xf32>
    %17 = arith.maximumf %15, %16 : vector<2x1x1xf32>
    %18 = vector.broadcast %11 : vector<2x1x1xf32> to vector<2x8x32xf32>
    %19 = arith.subf %0, %18 : vector<2x8x32xf32>
    %cst_8 = arith.constant 9.99999974E-6 : f32
    %20 = vector.broadcast %cst_8 : f32 to vector<2x1x1xf32>
    %21 = arith.addf %17, %20 : vector<2x1x1xf32>
    %22 = math.rsqrt %21 : vector<2x1x1xf32>
    %23 = vector.broadcast %22 : vector<2x1x1xf32> to vector<2x8x32xf32>
    %24 = arith.mulf %19, %23 : vector<2x8x32xf32>
    %c0_9 = arith.constant 0 : index
    %c0_10 = arith.constant 0 : index
    %25 = vector.load %arg4[%c0_9, %c0_10] : memref<8x1xf32, #tpu.memory_space<vmem>>, vector<8x1xf32>
    %26 = vector.shape_cast %25 : vector<8x1xf32> to vector<1x8x1xf32>
    %27 = vector.broadcast %26 : vector<1x8x1xf32> to vector<2x8x32xf32>
    %28 = arith.mulf %24, %27 : vector<2x8x32xf32>
    %c0_11 = arith.constant 0 : index
    %c0_12 = arith.constant 0 : index
    %29 = vector.load %arg5[%c0_11, %c0_12] : memref<8x1xf32, #tpu.memory_space<vmem>>, vector<8x1xf32>
    %30 = vector.shape_cast %29 : vector<8x1xf32> to vector<1x8x1xf32>
    %31 = vector.broadcast %30 : vector<1x8x1xf32> to vector<2x8x32xf32>
    %32 = arith.addf %28, %31 : vector<2x8x32xf32>
    %33 = vector.shape_cast %32 : vector<2x8x32xf32> to vector<16x32xf32>
    %34 = arith.truncf %33 : vector<16x32xf32> to vector<16x32xbf16>
    %c0_13 = arith.constant 0 : index
    %c0_14 = arith.constant 0 : index
    %35 = vector.load %arg8[%c0_13, %c0_14] : memref<32x32xbf16, #tpu.memory_space<vmem>>, vector<32x32xbf16>
    %cst_15 = arith.constant dense<0.000000e+00> : vector<16x32xf32>
    %36 = tpu.matmul %34, %35, %cst_15 {dimension_numbers = #tpu.dot_dimension_numbers<[1], [0], [0], [1], [0, 0, 1, 1], [], []>} : vector<16x32xbf16>, vector<32x32xbf16>, vector<16x32xf32> -> vector<16x32xf32>
    %c0_16 = arith.constant 0 : index
    %c0_17 = arith.constant 0 : index
    %37 = vector.load %arg9[%c0_16, %c0_17] : memref<1x32xf32, #tpu.memory_space<vmem>>, vector<1x32xf32>
    %38 = vector.broadcast %37 : vector<1x32xf32> to vector<16x32xf32>
    %39 = arith.addf %36, %38 : vector<16x32xf32>
    %cst_18 = arith.constant 0.353553385 : f32
    %40 = vector.broadcast %cst_18 : f32 to vector<16x32xf32>
    %41 = arith.mulf %39, %40 : vector<16x32xf32>
    %c0_19 = arith.constant 0 : index
    %c0_20 = arith.constant 0 : index
    %42 = vector.load %arg10[%c0_19, %c0_20] : memref<32x32xbf16, #tpu.memory_space<vmem>>, vector<32x32xbf16>
    %cst_21 = arith.constant dense<0.000000e+00> : vector<16x32xf32>
    %43 = tpu.matmul %34, %42, %cst_21 {dimension_numbers = #tpu.dot_dimension_numbers<[1], [0], [0], [1], [0, 0, 1, 1], [], []>} : vector<16x32xbf16>, vector<32x32xbf16>, vector<16x32xf32> -> vector<16x32xf32>
    %c0_22 = arith.constant 0 : index
    %c0_23 = arith.constant 0 : index
    %44 = vector.load %arg11[%c0_22, %c0_23] : memref<1x32xf32, #tpu.memory_space<vmem>>, vector<1x32xf32>
    %45 = vector.broadcast %44 : vector<1x32xf32> to vector<16x32xf32>
    %46 = arith.addf %43, %45 : vector<16x32xf32>
    %c0_24 = arith.constant 0 : index
    %c0_25 = arith.constant 0 : index
    %47 = vector.load %arg12[%c0_24, %c0_25] : memref<32x32xbf16, #tpu.memory_space<vmem>>, vector<32x32xbf16>
    %cst_26 = arith.constant dense<0.000000e+00> : vector<16x32xf32>
    %48 = tpu.matmul %34, %47, %cst_26 {dimension_numbers = #tpu.dot_dimension_numbers<[1], [0], [0], [1], [0, 0, 1, 1], [], []>} : vector<16x32xbf16>, vector<32x32xbf16>, vector<16x32xf32> -> vector<16x32xf32>
    %c0_27 = arith.constant 0 : index
    %c0_28 = arith.constant 0 : index
    %49 = vector.load %arg13[%c0_27, %c0_28] : memref<1x32xf32, #tpu.memory_space<vmem>>, vector<1x32xf32>
    %50 = vector.broadcast %49 : vector<1x32xf32> to vector<16x32xf32>
    %51 = arith.addf %48, %50 : vector<16x32xf32>
    %52 = vector.shape_cast %41 : vector<16x32xf32> to vector<2x8x32xf32>
    %53 = vector.shape_cast %46 : vector<16x32xf32> to vector<2x8x32xf32>
    %54 = vector.shape_cast %51 : vector<16x32xf32> to vector<2x8x32xf32>
    %55 = arith.truncf %54 : vector<2x8x32xf32> to vector<2x8x32xbf16>
    %c0_29 = arith.constant 0 : index
    %c0_30 = arith.constant 0 : index
    %c0_31 = arith.constant 0 : index
    %56 = vector.load %arg2[%c0_29, %c0_30, %c0_31] : memref<2x1x8xf32, #tpu.memory_space<vmem>>, vector<2x1x8xf32>
    %c0_32 = arith.constant 0 : index
    %c0_33 = arith.constant 0 : index
    %57 = vector.load %arg14[%c0_32, %c0_33] : memref<32x32xbf16, #tpu.memory_space<vmem>>, vector<32x32xbf16>
    %cst_34 = arith.constant 0.000000e+00 : f32
    %58 = vector.broadcast %cst_34 : f32 to vector<16x32xf32>
    %59 = vector.extract_strided_slice %52 {offsets = [0, 0, 0], sizes = [2, 8, 8], strides = [1, 1, 1]} : vector<2x8x32xf32> to vector<2x8x8xf32>
    %60 = arith.truncf %59 : vector<2x8x8xf32> to vector<2x8x8xbf16>
    %61 = vector.extract_strided_slice %53 {offsets = [0, 0, 0], sizes = [2, 8, 8], strides = [1, 1, 1]} : vector<2x8x32xf32> to vector<2x8x8xf32>
    %62 = arith.truncf %61 : vector<2x8x8xf32> to vector<2x8x8xbf16>
    %63 = vector.extract_strided_slice %55 {offsets = [0, 0, 0], sizes = [2, 8, 8], strides = [1, 1, 1]} : vector<2x8x32xbf16> to vector<2x8x8xbf16>
    "tpu.trace_start"() <{level = 10 : i32, message = "bqd,bkd->bqk"}> : () -> ()
    %cst_35 = arith.constant dense<0.000000e+00> : vector<2x8x8xf32>
    %64 = tpu.matmul %60, %62, %cst_35 {dimension_numbers = #tpu.dot_dimension_numbers<[2], [2], [1], [1], [0, 0, 0, 1, 1, 1], [0], [0]>} : vector<2x8x8xbf16>, vector<2x8x8xbf16>, vector<2x8x8xf32> -> vector<2x8x8xf32>
    "tpu.trace_stop"() : () -> ()
    %65 = vector.broadcast %56 : vector<2x1x8xf32> to vector<2x8x8xf32>
    %66 = arith.addf %64, %65 : vector<2x8x8xf32>
    %cst_36 = arith.constant dense<0xFF800000> : vector<2x8xf32>
    %67 = vector.multi_reduction <maximumf>, %66, %cst_36 [2] : vector<2x8x8xf32> to vector<2x8xf32>
    %68 = vector.shape_cast %67 : vector<2x8xf32> to vector<2x8x1xf32>
    %69 = vector.broadcast %68 : vector<2x8x1xf32> to vector<2x8x8xf32>
    %70 = arith.subf %66, %69 : vector<2x8x8xf32>
    %71 = math.exp %70 : vector<2x8x8xf32>
    %cst_37 = arith.constant dense<0.000000e+00> : vector<2x8xf32>
    %72 = vector.multi_reduction <add>, %71, %cst_37 [2] : vector<2x8x8xf32> to vector<2x8xf32>
    %73 = vector.shape_cast %72 : vector<2x8xf32> to vector<2x8x1xf32>
    %74 = tpu.reciprocal %73 {approx = true} : vector<2x8x1xf32> -> vector<2x8x1xf32>
    %75 = vector.broadcast %74 : vector<2x8x1xf32> to vector<2x8x8xf32>
    %76 = arith.mulf %71, %75 : vector<2x8x8xf32>
    %77 = arith.truncf %76 : vector<2x8x8xf32> to vector<2x8x8xbf16>
    "tpu.trace_start"() <{level = 10 : i32, message = "bqk,bkd->bqd"}> : () -> ()
    %cst_38 = arith.constant dense<0.000000e+00> : vector<2x8x8xf32>
    %78 = tpu.matmul %77, %63, %cst_38 {dimension_numbers = #tpu.dot_dimension_numbers<[2], [1], [1], [2], [0, 0, 0, 1, 1, 2], [0], [0]>} : vector<2x8x8xbf16>, vector<2x8x8xbf16>, vector<2x8x8xf32> -> vector<2x8x8xf32>
    "tpu.trace_stop"() : () -> ()
    %79 = vector.shape_cast %78 : vector<2x8x8xf32> to vector<16x8xf32>
    %80 = arith.truncf %79 : vector<16x8xf32> to vector<16x8xbf16>
    %81 = vector.extract_strided_slice %57 {offsets = [0, 0], sizes = [8, 32], strides = [1, 1]} : vector<32x32xbf16> to vector<8x32xbf16>
    %cst_39 = arith.constant dense<0.000000e+00> : vector<16x32xf32>
    %82 = tpu.matmul %80, %81, %cst_39 {dimension_numbers = #tpu.dot_dimension_numbers<[1], [0], [0], [1], [0, 0, 1, 1], [], []>} : vector<16x8xbf16>, vector<8x32xbf16>, vector<16x32xf32> -> vector<16x32xf32>
    %83 = arith.addf %58, %82 : vector<16x32xf32>
    %84 = vector.extract_strided_slice %52 {offsets = [0, 0, 8], sizes = [2, 8, 8], strides = [1, 1, 1]} : vector<2x8x32xf32> to vector<2x8x8xf32>
    %85 = arith.truncf %84 : vector<2x8x8xf32> to vector<2x8x8xbf16>
    %86 = vector.extract_strided_slice %53 {offsets = [0, 0, 8], sizes = [2, 8, 8], strides = [1, 1, 1]} : vector<2x8x32xf32> to vector<2x8x8xf32>
    %87 = arith.truncf %86 : vector<2x8x8xf32> to vector<2x8x8xbf16>
    %88 = vector.extract_strided_slice %55 {offsets = [0, 0, 8], sizes = [2, 8, 8], strides = [1, 1, 1]} : vector<2x8x32xbf16> to vector<2x8x8xbf16>
    "tpu.trace_start"() <{level = 10 : i32, message = "bqd,bkd->bqk"}> : () -> ()
    %cst_40 = arith.constant dense<0.000000e+00> : vector<2x8x8xf32>
    %89 = tpu.matmul %85, %87, %cst_40 {dimension_numbers = #tpu.dot_dimension_numbers<[2], [2], [1], [1], [0, 0, 0, 1, 1, 1], [0], [0]>} : vector<2x8x8xbf16>, vector<2x8x8xbf16>, vector<2x8x8xf32> -> vector<2x8x8xf32>
    "tpu.trace_stop"() : () -> ()
    %90 = vector.broadcast %56 : vector<2x1x8xf32> to vector<2x8x8xf32>
    %91 = arith.addf %89, %90 : vector<2x8x8xf32>
    %cst_41 = arith.constant dense<0xFF800000> : vector<2x8xf32>
    %92 = vector.multi_reduction <maximumf>, %91, %cst_41 [2] : vector<2x8x8xf32> to vector<2x8xf32>
    %93 = vector.shape_cast %92 : vector<2x8xf32> to vector<2x8x1xf32>
    %94 = vector.broadcast %93 : vector<2x8x1xf32> to vector<2x8x8xf32>
    %95 = arith.subf %91, %94 : vector<2x8x8xf32>
    %96 = math.exp %95 : vector<2x8x8xf32>
    %cst_42 = arith.constant dense<0.000000e+00> : vector<2x8xf32>
    %97 = vector.multi_reduction <add>, %96, %cst_42 [2] : vector<2x8x8xf32> to vector<2x8xf32>
    %98 = vector.shape_cast %97 : vector<2x8xf32> to vector<2x8x1xf32>
    %99 = tpu.reciprocal %98 {approx = true} : vector<2x8x1xf32> -> vector<2x8x1xf32>
    %100 = vector.broadcast %99 : vector<2x8x1xf32> to vector<2x8x8xf32>
    %101 = arith.mulf %96, %100 : vector<2x8x8xf32>
    %102 = arith.truncf %101 : vector<2x8x8xf32> to vector<2x8x8xbf16>
    "tpu.trace_start"() <{level = 10 : i32, message = "bqk,bkd->bqd"}> : () -> ()
    %cst_43 = arith.constant dense<0.000000e+00> : vector<2x8x8xf32>
    %103 = tpu.matmul %102, %88, %cst_43 {dimension_numbers = #tpu.dot_dimension_numbers<[2], [1], [1], [2], [0, 0, 0, 1, 1, 2], [0], [0]>} : vector<2x8x8xbf16>, vector<2x8x8xbf16>, vector<2x8x8xf32> -> vector<2x8x8xf32>
    "tpu.trace_stop"() : () -> ()
    %104 = vector.shape_cast %103 : vector<2x8x8xf32> to vector<16x8xf32>
    %105 = arith.truncf %104 : vector<16x8xf32> to vector<16x8xbf16>
    %106 = vector.extract_strided_slice %57 {offsets = [8, 0], sizes = [8, 32], strides = [1, 1]} : vector<32x32xbf16> to vector<8x32xbf16>
    %cst_44 = arith.constant dense<0.000000e+00> : vector<16x32xf32>
    %107 = tpu.matmul %105, %106, %cst_44 {dimension_numbers = #tpu.dot_dimension_numbers<[1], [0], [0], [1], [0, 0, 1, 1], [], []>} : vector<16x8xbf16>, vector<8x32xbf16>, vector<16x32xf32> -> vector<16x32xf32>
    %108 = arith.addf %83, %107 : vector<16x32xf32>
    %109 = vector.extract_strided_slice %52 {offsets = [0, 0, 16], sizes = [2, 8, 8], strides = [1, 1, 1]} : vector<2x8x32xf32> to vector<2x8x8xf32>
    %110 = arith.truncf %109 : vector<2x8x8xf32> to vector<2x8x8xbf16>
    %111 = vector.extract_strided_slice %53 {offsets = [0, 0, 16], sizes = [2, 8, 8], strides = [1, 1, 1]} : vector<2x8x32xf32> to vector<2x8x8xf32>
    %112 = arith.truncf %111 : vector<2x8x8xf32> to vector<2x8x8xbf16>
    %113 = vector.extract_strided_slice %55 {offsets = [0, 0, 16], sizes = [2, 8, 8], strides = [1, 1, 1]} : vector<2x8x32xbf16> to vector<2x8x8xbf16>
    "tpu.trace_start"() <{level = 10 : i32, message = "bqd,bkd->bqk"}> : () -> ()
    %cst_45 = arith.constant dense<0.000000e+00> : vector<2x8x8xf32>
    %114 = tpu.matmul %110, %112, %cst_45 {dimension_numbers = #tpu.dot_dimension_numbers<[2], [2], [1], [1], [0, 0, 0, 1, 1, 1], [0], [0]>} : vector<2x8x8xbf16>, vector<2x8x8xbf16>, vector<2x8x8xf32> -> vector<2x8x8xf32>
    "tpu.trace_stop"() : () -> ()
    %115 = vector.broadcast %56 : vector<2x1x8xf32> to vector<2x8x8xf32>
    %116 = arith.addf %114, %115 : vector<2x8x8xf32>
    %cst_46 = arith.constant dense<0xFF800000> : vector<2x8xf32>
    %117 = vector.multi_reduction <maximumf>, %116, %cst_46 [2] : vector<2x8x8xf32> to vector<2x8xf32>
    %118 = vector.shape_cast %117 : vector<2x8xf32> to vector<2x8x1xf32>
    %119 = vector.broadcast %118 : vector<2x8x1xf32> to vector<2x8x8xf32>
    %120 = arith.subf %116, %119 : vector<2x8x8xf32>
    %121 = math.exp %120 : vector<2x8x8xf32>
    %cst_47 = arith.constant dense<0.000000e+00> : vector<2x8xf32>
    %122 = vector.multi_reduction <add>, %121, %cst_47 [2] : vector<2x8x8xf32> to vector<2x8xf32>
    %123 = vector.shape_cast %122 : vector<2x8xf32> to vector<2x8x1xf32>
    %124 = tpu.reciprocal %123 {approx = true} : vector<2x8x1xf32> -> vector<2x8x1xf32>
    %125 = vector.broadcast %124 : vector<2x8x1xf32> to vector<2x8x8xf32>
    %126 = arith.mulf %121, %125 : vector<2x8x8xf32>
    %127 = arith.truncf %126 : vector<2x8x8xf32> to vector<2x8x8xbf16>
    "tpu.trace_start"() <{level = 10 : i32, message = "bqk,bkd->bqd"}> : () -> ()
    %cst_48 = arith.constant dense<0.000000e+00> : vector<2x8x8xf32>
    %128 = tpu.matmul %127, %113, %cst_48 {dimension_numbers = #tpu.dot_dimension_numbers<[2], [1], [1], [2], [0, 0, 0, 1, 1, 2], [0], [0]>} : vector<2x8x8xbf16>, vector<2x8x8xbf16>, vector<2x8x8xf32> -> vector<2x8x8xf32>
    "tpu.trace_stop"() : () -> ()
    %129 = vector.shape_cast %128 : vector<2x8x8xf32> to vector<16x8xf32>
    %130 = arith.truncf %129 : vector<16x8xf32> to vector<16x8xbf16>
    %131 = vector.extract_strided_slice %57 {offsets = [16, 0], sizes = [8, 32], strides = [1, 1]} : vector<32x32xbf16> to vector<8x32xbf16>
    %cst_49 = arith.constant dense<0.000000e+00> : vector<16x32xf32>
    %132 = tpu.matmul %130, %131, %cst_49 {dimension_numbers = #tpu.dot_dimension_numbers<[1], [0], [0], [1], [0, 0, 1, 1], [], []>} : vector<16x8xbf16>, vector<8x32xbf16>, vector<16x32xf32> -> vector<16x32xf32>
    %133 = arith.addf %108, %132 : vector<16x32xf32>
    %134 = vector.extract_strided_slice %52 {offsets = [0, 0, 24], sizes = [2, 8, 8], strides = [1, 1, 1]} : vector<2x8x32xf32> to vector<2x8x8xf32>
    %135 = arith.truncf %134 : vector<2x8x8xf32> to vector<2x8x8xbf16>
    %136 = vector.extract_strided_slice %53 {offsets = [0, 0, 24], sizes = [2, 8, 8], strides = [1, 1, 1]} : vector<2x8x32xf32> to vector<2x8x8xf32>
    %137 = arith.truncf %136 : vector<2x8x8xf32> to vector<2x8x8xbf16>
    %138 = vector.extract_strided_slice %55 {offsets = [0, 0, 24], sizes = [2, 8, 8], strides = [1, 1, 1]} : vector<2x8x32xbf16> to vector<2x8x8xbf16>
    "tpu.trace_start"() <{level = 10 : i32, message = "bqd,bkd->bqk"}> : () -> ()
    %cst_50 = arith.constant dense<0.000000e+00> : vector<2x8x8xf32>
    %139 = tpu.matmul %135, %137, %cst_50 {dimension_numbers = #tpu.dot_dimension_numbers<[2], [2], [1], [1], [0, 0, 0, 1, 1, 1], [0], [0]>} : vector<2x8x8xbf16>, vector<2x8x8xbf16>, vector<2x8x8xf32> -> vector<2x8x8xf32>
    "tpu.trace_stop"() : () -> ()
    %140 = vector.broadcast %56 : vector<2x1x8xf32> to vector<2x8x8xf32>
    %141 = arith.addf %139, %140 : vector<2x8x8xf32>
    %cst_51 = arith.constant dense<0xFF800000> : vector<2x8xf32>
    %142 = vector.multi_reduction <maximumf>, %141, %cst_51 [2] : vector<2x8x8xf32> to vector<2x8xf32>
    %143 = vector.shape_cast %142 : vector<2x8xf32> to vector<2x8x1xf32>
    %144 = vector.broadcast %143 : vector<2x8x1xf32> to vector<2x8x8xf32>
    %145 = arith.subf %141, %144 : vector<2x8x8xf32>
    %146 = math.exp %145 : vector<2x8x8xf32>
    %cst_52 = arith.constant dense<0.000000e+00> : vector<2x8xf32>
    %147 = vector.multi_reduction <add>, %146, %cst_52 [2] : vector<2x8x8xf32> to vector<2x8xf32>
    %148 = vector.shape_cast %147 : vector<2x8xf32> to vector<2x8x1xf32>
    %149 = tpu.reciprocal %148 {approx = true} : vector<2x8x1xf32> -> vector<2x8x1xf32>
    %150 = vector.broadcast %149 : vector<2x8x1xf32> to vector<2x8x8xf32>
    %151 = arith.mulf %146, %150 : vector<2x8x8xf32>
    %152 = arith.truncf %151 : vector<2x8x8xf32> to vector<2x8x8xbf16>
    "tpu.trace_start"() <{level = 10 : i32, message = "bqk,bkd->bqd"}> : () -> ()
    %cst_53 = arith.constant dense<0.000000e+00> : vector<2x8x8xf32>
    %153 = tpu.matmul %152, %138, %cst_53 {dimension_numbers = #tpu.dot_dimension_numbers<[2], [1], [1], [2], [0, 0, 0, 1, 1, 2], [0], [0]>} : vector<2x8x8xbf16>, vector<2x8x8xbf16>, vector<2x8x8xf32> -> vector<2x8x8xf32>
    "tpu.trace_stop"() : () -> ()
    %154 = vector.shape_cast %153 : vector<2x8x8xf32> to vector<16x8xf32>
    %155 = arith.truncf %154 : vector<16x8xf32> to vector<16x8xbf16>
    %156 = vector.extract_strided_slice %57 {offsets = [24, 0], sizes = [8, 32], strides = [1, 1]} : vector<32x32xbf16> to vector<8x32xbf16>
    %cst_54 = arith.constant dense<0.000000e+00> : vector<16x32xf32>
    %157 = tpu.matmul %155, %156, %cst_54 {dimension_numbers = #tpu.dot_dimension_numbers<[1], [0], [0], [1], [0, 0, 1, 1], [], []>} : vector<16x8xbf16>, vector<8x32xbf16>, vector<16x32xf32> -> vector<16x32xf32>
    %158 = arith.addf %133, %157 : vector<16x32xf32>
    %c0_55 = arith.constant 0 : index
    %c0_56 = arith.constant 0 : index
    %159 = vector.load %arg15[%c0_55, %c0_56] : memref<1x32xf32, #tpu.memory_space<vmem>>, vector<1x32xf32>
    %160 = vector.broadcast %159 : vector<1x32xf32> to vector<16x32xf32>
    %161 = arith.addf %158, %160 : vector<16x32xf32>
    %162 = vector.shape_cast %161 : vector<16x32xf32> to vector<2x8x32xf32>
    %c0_57 = arith.constant 0 : index
    %c0_58 = arith.constant 0 : index
    %c0_59 = arith.constant 0 : index
    %163 = vector.load %arg3[%c0_57, %c0_58, %c0_59] : memref<2x8x1xf32, #tpu.memory_space<vmem>>, vector<2x8x1xf32>
    %c0_60 = arith.constant 0 : index
    %c0_61 = arith.constant 0 : index
    %164 = vector.load %arg20[%c0_60, %c0_61] : memref<1x32xf32, #tpu.memory_space<vmem>>, vector<1x32xf32>
    %165 = vector.shape_cast %164 : vector<1x32xf32> to vector<1x1x32xf32>
    %166 = vector.broadcast %165 : vector<1x1x32xf32> to vector<2x8x32xf32>
    %167 = arith.mulf %162, %166 : vector<2x8x32xf32>
    %168 = vector.broadcast %163 : vector<2x8x1xf32> to vector<2x8x32xf32>
    %169 = arith.mulf %167, %168 : vector<2x8x32xf32>
    %170 = arith.addf %169, %0 : vector<2x8x32xf32>
    %c0_62 = arith.constant 0 : index
    %c0_63 = arith.constant 0 : index
    %171 = vector.load %arg21[%c0_62, %c0_63] : memref<1x32xf32, #tpu.memory_space<vmem>>, vector<1x32xf32>
    %172 = vector.shape_cast %171 : vector<1x32xf32> to vector<1x1x32xf32>
    %173 = vector.broadcast %172 : vector<1x1x32xf32> to vector<2x8x32xf32>
    %174 = arith.mulf %169, %173 : vector<2x8x32xf32>
    %175 = vector.broadcast %163 : vector<2x8x1xf32> to vector<2x8x32xf32>
    %176 = arith.mulf %174, %175 : vector<2x8x32xf32>
    %177 = arith.addf %176, %170 : vector<2x8x32xf32>
    %178 = vector.broadcast %163 : vector<2x8x1xf32> to vector<2x8x32xf32>
    %179 = arith.mulf %177, %178 : vector<2x8x32xf32>
    %c0_64 = arith.constant 0 : index
    %c0_65 = arith.constant 0 : index
    %c0_66 = arith.constant 0 : index
    %180 = vector.load %arg22[%c0_64, %c0_65, %c0_66] : memref<2x8x32xf32, #tpu.memory_space<vmem>>, vector<2x8x32xf32>
    tpu.vector_store %arg22[%c0_64, %c0_65, %c0_66], %179 {strides = array<i32>} : memref<2x8x32xf32, #tpu.memory_space<vmem>>, vector<2x8x32xf32>,
    return
  }
  func.func @transform_0(%arg0: i32) -> (i32, i32, i32) {
    %c0_i32 = arith.constant 0 : i32
    %c0_i32_0 = arith.constant 0 : i32
    %c0_i32_1 = arith.constant 0 : i32
    return %arg0, %c0_i32, %c0_i32_0 : i32, i32, i32
  }
  func.func @transform_1(%arg0: i32) -> (i32, i32, i32) {
    %c0_i32 = arith.constant 0 : i32
    %c0_i32_0 = arith.constant 0 : i32
    %c0_i32_1 = arith.constant 0 : i32
    return %arg0, %c0_i32, %c0_i32_0 : i32, i32, i32
  }
  func.func @transform_2(%arg0: i32) -> (i32, i32, i32) {
    %c0_i32 = arith.constant 0 : i32
    %c0_i32_0 = arith.constant 0 : i32
    %c0_i32_1 = arith.constant 0 : i32
    return %arg0, %c0_i32, %c0_i32_0 : i32, i32, i32
  }
  func.func @transform_3(%arg0: i32) -> (i32, i32) {
    %c0_i32 = arith.constant 0 : i32
    %c0_i32_0 = arith.constant 0 : i32
    %c0_i32_1 = arith.constant 0 : i32
    return %c0_i32, %c0_i32_0 : i32, i32
  }
  func.func @transform_4(%arg0: i32) -> (i32, i32) {
    %c0_i32 = arith.constant 0 : i32
    %c0_i32_0 = arith.constant 0 : i32
    %c0_i32_1 = arith.constant 0 : i32
    return %c0_i32, %c0_i32_0 : i32, i32
  }
  func.func @transform_5(%arg0: i32) -> (i32, i32) {
    %c0_i32 = arith.constant 0 : i32
    %c0_i32_0 = arith.constant 0 : i32
    %c0_i32_1 = arith.constant 0 : i32
    return %c0_i32, %c0_i32_0 : i32, i32
  }
  func.func @transform_6(%arg0: i32) -> (i32, i32) {
    %c0_i32 = arith.constant 0 : i32
    %c0_i32_0 = arith.constant 0 : i32
    %c0_i32_1 = arith.constant 0 : i32
    return %c0_i32, %c0_i32_0 : i32, i32
  }
  func.func @transform_7(%arg0: i32) -> (i32, i32) {
    %c0_i32 = arith.constant 0 : i32
    %c0_i32_0 = arith.constant 0 : i32
    %c0_i32_1 = arith.constant 0 : i32
    return %c0_i32, %c0_i32_0 : i32, i32
  }
  func.func @transform_8(%arg0: i32) -> (i32, i32) {
    %c0_i32 = arith.constant 0 : i32
    %c0_i32_0 = arith.constant 0 : i32
    %c0_i32_1 = arith.constant 0 : i32
    return %c0_i32, %c0_i32_0 : i32, i32
  }
  func.func @transform_9(%arg0: i32) -> (i32, i32) {
    %c0_i32 = arith.constant 0 : i32
    %c0_i32_0 = arith.constant 0 : i32
    %c0_i32_1 = arith.constant 0 : i32
    return %c0_i32, %c0_i32_0 : i32, i32
  }
  func.func @transform_10(%arg0: i32) -> (i32, i32) {
    %c0_i32 = arith.constant 0 : i32
    %c0_i32_0 = arith.constant 0 : i32
    %c0_i32_1 = arith.constant 0 : i32
    return %c0_i32, %c0_i32_0 : i32, i32
  }
  func.func @transform_11(%arg0: i32) -> (i32, i32) {
    %c0_i32 = arith.constant 0 : i32
    %c0_i32_0 = arith.constant 0 : i32
    %c0_i32_1 = arith.constant 0 : i32
    return %c0_i32, %c0_i32_0 : i32, i32
  }
  func.func @transform_12(%arg0: i32) -> (i32, i32) {
    %c0_i32 = arith.constant 0 : i32
    %c0_i32_0 = arith.constant 0 : i32
    %c0_i32_1 = arith.constant 0 : i32
    return %c0_i32, %c0_i32_0 : i32, i32
  }
  func.func @transform_13(%arg0: i32) -> (i32, i32) {
    %c0_i32 = arith.constant 0 : i32
    %c0_i32_0 = arith.constant 0 : i32
    %c0_i32_1 = arith.constant 0 : i32
    return %c0_i32, %c0_i32_0 : i32, i32
  }
  func.func @transform_14(%arg0: i32) -> (i32, i32) {
    %c0_i32 = arith.constant 0 : i32
    %c0_i32_0 = arith.constant 0 : i32
    %c0_i32_1 = arith.constant 0 : i32
    return %c0_i32, %c0_i32_0 : i32, i32
  }
  func.func @transform_15(%arg0: i32) -> (i32, i32) {
    %c0_i32 = arith.constant 0 : i32
    %c0_i32_0 = arith.constant 0 : i32
    %c0_i32_1 = arith.constant 0 : i32
    return %c0_i32, %c0_i32_0 : i32, i32
  }
  func.func @transform_16(%arg0: i32) -> (i32, i32) {
    %c0_i32 = arith.constant 0 : i32
    %c0_i32_0 = arith.constant 0 : i32
    %c0_i32_1 = arith.constant 0 : i32
    return %c0_i32, %c0_i32_0 : i32, i32
  }
  func.func @transform_17(%arg0: i32) -> (i32, i32) {
    %c0_i32 = arith.constant 0 : i32
    %c0_i32_0 = arith.constant 0 : i32
    %c0_i32_1 = arith.constant 0 : i32
    return %c0_i32, %c0_i32_0 : i32, i32
  }
  func.func @transform_18(%arg0: i32) -> (i32, i32) {
    %c0_i32 = arith.constant 0 : i32
    %c0_i32_0 = arith.constant 0 : i32
    %c0_i32_1 = arith.constant 0 : i32
    return %c0_i32, %c0_i32_0 : i32, i32
  }
  func.func @transform_19(%arg0: i32) -> (i32, i32) {
    %c0_i32 = arith.constant 0 : i32
    %c0_i32_0 = arith.constant 0 : i32
    %c0_i32_1 = arith.constant 0 : i32
    return %c0_i32, %c0_i32_0 : i32, i32
  }
  func.func @transform_20(%arg0: i32) -> (i32, i32) {
    %c0_i32 = arith.constant 0 : i32
    %c0_i32_0 = arith.constant 0 : i32
    %c0_i32_1 = arith.constant 0 : i32
    return %c0_i32, %c0_i32_0 : i32, i32
  }
  func.func @transform_21(%arg0: i32) -> (i32, i32, i32) {
    %c0_i32 = arith.constant 0 : i32
    %c0_i32_0 = arith.constant 0 : i32
    %c0_i32_1 = arith.constant 0 : i32
    return %arg0, %c0_i32, %c0_i32_0 : i32, i32, i32
  }
}

</mosaic_0001>

<bundles_post_ra>
// kernel: tpu_custom_call.1
= control target key start
LH: loop header
LB: loop body
LE: loop exit
PB: predicated region body
PF: predicated region fallthrough
CT: control target
= control target key end

     0   :  { %s3295_s0 = inlined_call_operand.vmem [shape: f32[4,8,32], index: 0, kind: input, shape index: {}]   ;;  %s3296_s1 = inlined_call_operand.hbm [shape: f32[4,1,8], index: 1, kind: input, shape index: {}]   ;;  %s3297_s2 = inlined_call_operand.vmem [shape: f32[4,8,1], index: 2, kind: input, shape index: {}]   ;;  %s3298_s3 = inlined_call_operand.vmem [shape: f32[8,1], index: 3, kind: input, shape index: {}]   ;;  %s3299_s4 = inlined_call_operand.vmem [shape: f32[8,1], index: 4, kind: input, shape index: {}]   ;;  %s3300_s5 = inlined_call_operand.vmem [shape: f32[8,1], index: 5, kind: input, shape index: {}]   ;;  %s3301_s6 = inlined_call_operand.vmem [shape: f32[8,1], index: 6, kind: input, shape index: {}]   ;;  %s3302_s7 = inlined_call_operand.vmem [shape: bf16[32,32], index: 7, kind: input, shape index: {}]   ;;  %s3303_s8 = inlined_call_operand.vmem [shape: f32[1,32], index: 8, kind: input, shape index: {}]   ;;  %s3304_s9 = inlined_call_operand.vmem [shape: bf16[32,32], index: 9, kind: input, shape index: {}]   ;;  %s3305_s10 = inlined_call_operand.vmem [shape: f32[1,32], index: 10, kind: input, shape index: {}]   ;;  %s3306_s11 = inlined_call_operand.vmem [shape: bf16[32,32], index: 11, kind: input, shape index: {}]   ;;  %s3307_s12 = inlined_call_operand.vmem [shape: f32[1,32], index: 12, kind: input, shape index: {}]   ;;  %s3308_s13 = inlined_call_operand.vmem [shape: bf16[32,32], index: 13, kind: input, shape index: {}]   ;;  %s3309_s14 = inlined_call_operand.vmem [shape: f32[1,32], index: 14, kind: input, shape index: {}]   ;;  %s3310_s15 = inlined_call_operand.vmem [shape: bf16[32,64], index: 15, kind: input, shape index: {}]   ;;  %s3311_s16 = inlined_call_operand.vmem [shape: f32[1,64], index: 16, kind: input, shape index: {}]   ;;  %s3312_s17 = inlined_call_operand.vmem [shape: bf16[64,32], index: 17, kind: input, shape index: {}]   ;;  %s3313_s18 = inlined_call_operand.vmem [shape: f32[1,32], index: 18, kind: input, shape index: {}]   ;;  %s3314_s19 = inlined_call_operand.vmem [shape: f32[1,32], index: 19, kind: input, shape index: {}]   ;;  %s3315_s20 = inlined_call_operand.vmem [shape: f32[1,32], index: 20, kind: input, shape index: {}]   ;;  %s3316_s21 = inlined_call_operand.hbm [shape: f32[4,8,32], index: 21, kind: output, shape index: {}]  }
   0x1   :  { %3325 = sst [smem:[#allocation12_spill]] %s3295_s0 }
   0x2   :  { %3326 = sst [smem:[#allocation13_spill]] %s3296_s1 }
   0x3   :  { %3327 = sst [smem:[#allocation14_spill]] %s3297_s2 }
   0x4   :  { %3328 = sst [smem:[#allocation15_spill]] %s3298_s3 }
   0x5   :  { %3329 = sst [smem:[#allocation16_spill]] %s3299_s4 }
   0x6   :  { %26 = vsyncpa [#allocation3], 0 }
   0x7   :  { %28 = vsyncpa [#allocation3 + $0x1], 0 }
   0x8   :  { %29 = vsyncpa [#allocation4], 0 }
   0x9   :  { %31 = vsyncpa [#allocation4 + $0x1], 0  ;;  %s2820_s15 = smov 0   ;;  %s2822_s16 = smov 0  }
   0xa   :  { %s2824_s17 = smov 0   ;;  %s2826_s18 = smov 0  }
   0xb LB: > { %3330 = sst [smem:[#allocation8_spill]] %s2692_s17  ;;  %s2841_s6 = sadd.s32 4294967295, %s2696_s18   ;;  %s2696_s18 = sphi %s2826_s18, %s3350_s18   ;;  %s2692_s17 = sphi %s2824_s17, %s3352_s17   ;;  %s2688_s16 = sphi %s2822_s16, %s3354_s16   ;;  %s2684_s15 = sphi %s2820_s15, %s3353_s15  }
   0xc   : > { %s2253_s2 = sadd.s32 4294967294, %s2696_s18   ;;  %s2845_s24 = sadd.s32 1, %s2696_s18  }
   0xd   : > { %3331 = sst [smem:[#allocation9_spill]] %s2845_s24  ;;  %s70_s25 = sadd.s32 1, %s2692_s17 }
   0xe   : > { %s67_s26 = ssub.s32 %s2696_s18, %s2845_s24  ;;  %p77_p0 = scmp.ne.s32.totalorder %s2692_s17, %s2688_s16 }
   0xf   : > { %p68_p1 = scmp.eq.s32.totalorder %s67_s26, 0  ;;  %p78_p2 = scmp.eq.s32.totalorder %s2696_s18, 0 }
  0x10   : > { %p83_p3 = scmp.ne.s32.totalorder %s2688_s16, %s2684_s15  ;;  %p84_p4 = scmp.eq.s32.totalorder %s2841_s6, 0 }
  0x11   : > { %s2857_s3 = scalar_select %p68_p1, %s2692_s17, %s70_s25  }
  0x12   : > { %p2859_p5 = por %p78_p2, %p77_p0  ;;  %p2863_p6 = por %p84_p4, %p83_p3 }
  0x13   : > { %3332 = sst [smem:[#allocation10_spill]] %s2857_s3  ;;  %p511_p7 = scmp.eq.s32.totalorder %s2841_s6, 1 }
  0x14   : > { %s3334_s28 = scalar_select %p2863_p6, 1, 0 }
  0x15   : > { %p517_p8 = scmp.eq.s32.totalorder %s2253_s2, 1  ;;  %p2515_p10 = scmp.lt.s32.totalorder %s2696_s18, 2 }
  0x16   : > { %p2870_p11 = por %p511_p7, %p77_p0  ;;  %s600_s0 = sand.u32 1, %s2692_s17  }
  0x17   : > { %p2874_p12 = por %p517_p8, %p83_p3  ;;  %s2308_s30 = sshll.u32 %s2696_s18, 5 }
  0x18   : > { %s3335_s29 = scalar_select %p2870_p11, 1, 0 }
  0x19   : > { %s3336_s4 = scalar_select %p2874_p12, 1, 0 }
  0x1a   : > { %s2256_s5 = sshll.u32 %s600_s0, 1  ;;  %s3338_s1 = sld [smem:[#allocation13_spill]] }
  0x1b   : > { %3337 = sst [smem:[#allocation11_spill]] %s3336_s4  ;;  %s604_s2 = scalar_lea.vmem [#allocation2], %s2256_s5 }
  0x1c   : > { %s611_s26 = sshll.u32 %s604_s2, 4  ;;  %p2887_p13 = pnand %p2515_p10, %p2859_p5  ;;  %s2891_s26 = int_to_ptr.vmem [resolvable:$true] %s611_s26 }
  0x1d   : > { %s2893_s17 = scalar_lea.sflag [#allocation3], %s600_s0 }
  0x1e   : > { %p2606_p1 = pneg %p2887_p13 }
  0x20   : > { %s2883_s25 = scalar_lea.hbm %s3338_s1, %s2308_s30  ;;  %s2609_s5 = scalar_lea.hbm %s3338_s1, 64 }
  0x21   : > { %s2604_s24 = scalar_lea.hbm %s2883_s25, 32  ;;  %p2610_p4 = scmp.lt.s32.totalorder %s2883_s25, %s3338_s1 }
  0x22   : > { %p2605_p0 = scmp.ne.s32.totalorder %s2883_s25, %s2604_s24  ;;  %p2611_p5 = scmp.lt.s32.totalorder %s2609_s5, %s2604_s24 }
  0x24   : > { %p2607_p2 = pnand %p2606_p1, %p2605_p0  ;;  %p2612_p7 = por %p2611_p5, %p2610_p4 }
  0x26   : > { %p2608_p3 = pneg %p2607_p2 }
  0x28   : > { %p2613_p8 = pnand %p2612_p7, %p2608_p3 }
  0x2a   : > { %2616 = shalt.err (!%p2613_p8)
}
  0x2b   : > { %s2617_s0 = scalar_lea.vmem %s2891_s26, 32  ;;  %s2698_s2 = smov [#allocation2]  }
  0x2c   : > { %p2618_p10 = scmp.ne.s32.totalorder %s2891_s26, %s2617_s0  ;;  %s2622_s4 = sshll.u32 %s2698_s2, 4  ;;  %s2623_s4 = int_to_ptr.vmem [resolvable:$false] %s2622_s4 }
  0x2d   : > { %s2624_s30 = scalar_lea.vmem %s2623_s4, 64  ;;  %p2625_p2 = scmp.lt.s32.totalorder %s2891_s26, %s2623_s4 }
  0x2e   : > { %p2620_p9 = pnand %p2618_p10, %p2606_p1  ;;  %p2626_p12 = scmp.lt.s32.totalorder %s2624_s30, %s2617_s0 }
  0x30   : > { %p2621_p0 = pneg %p2620_p9  ;;  %p2627_p11 = por %p2626_p12, %p2625_p2 }
  0x32   : > { %p2628_p6 = pnand %p2627_p11, %p2621_p0 }
  0x34   : > { %2631 = shalt.err (!%p2628_p6)
}
  0x35   : > { %s2699_s24 = smov 16   ;;  %s2700_s22 = smov 1  }
  0x36   : > { %2510 = dma.hbm_to_vmem [thread:$0]  (!%p2887_p13), %s2883_s25, 32, %s2891_s26, %s2893_s17, %s2699_s24, %s2699_s24, %s2700_s22  }
  0x37   : > { %p2259_p9 = scmp.ge.s32.totalorder %s2696_s18, 1  ;;  %p628_p1 = scmp.lt.s32.totalorder %s2696_s18, 3 }
  0x39   : > { %p629_p3 = pnand %p2259_p9, %p628_p1 }
  0x3a   : > { %s2917_s4 = sand.u32 (!%p629_p3), 1, %s2688_s16   ;;  %p3340_p6 = scmp.ne.s32.totalorder (!%p629_p3), %s3334_s28, 0 }
  0x3b   : > { %632 = sbr.rel (%p629_p3) target bundleno = 3341 (0xd0d), region = 104  ;;  %s2260_s5 = sshll.u32 (!%p629_p3), %s2917_s4, 1 }
  0x3c   : > { %s635_s27 = scalar_lea.sflag (!%p629_p3), [#allocation3], %s2917_s4  ;;  %s2921_s23 = scalar_lea.vmem (!%p629_p3), [#allocation2], %s2260_s5 }
  0x40   : > { %2675 = dma.done.wait (%p3340_p6), %s635_s27, 32  }
  0x41   : > { %2677 = vsyncadd (%p3340_p6), %s635_s27, 4294967264  ;;  %s2262_s17 = sshll.u32 %s2841_s6, 1  ;;  %v2701_v0 = vmov 0   ;;  %vm724_vm0 = vcmask 261120   ;;  %s3341_s0 = sld [smem:[#allocation12_spill]]  ;;  %v2561_v11 = vld [vmem:[%s3302_s7 + $0x8] sm:$0xff]  }
  0x42   : > { %p708_p11 = scmp.lt.s32.totalorder %s2262_s17, 3  ;;  %2559 = vset.pattern.permute.xlu0 %v2701_v0  ;;  %2560 = vset.pattern.permute.xlu1 %v2701_v0  ;;  %s3342_s24 = sld [smem:[#allocation16_spill]]  ;;  %v2562_v12 = vld [vmem:[%s3304_s9 + $0x8] sm:$0xff]   ;;  %v2702_v13 = vmov 0.0   ;;  %v2563_v14 = vld [vmem:[%s3302_s7] sm:$0xff]   ;;  %vm2703_vm1 = vmmov 0  }
  0x43   : > { %s3343_s27 = sld [smem:[#allocation15_spill]]  ;;  %2359 = vmatprep.subr.bf16.mxu0 %v2702_v13  ;;  %2367 = vmatprep.subr.bf16.mxu1 %v2702_v13  ;;  %v2564_v15 = vld [vmem:[%s3304_s9] sm:$0xff]   ;;  %vm1019_vm2 = vcmask 64512   ;;  %vm1139_vm3 = vcmask 1043456   ;;  %s2261_s22 = sshll.u32 %s2917_s4, 4 }
  0x44   : > { %s3356_s17 = smov (!%p708_p11, %s2262_s17), 3  ;;  %2360 = vmatpush3.bf16.msra.mxu0 %v2561_v11  ;;  %2368 = vmatpush3.bf16.msra.mxu1 %v2562_v12  ;;  %p3346_p13 = scmp.ne.s32.totalorder %s3335_s29, 0 }
  0x45   : > { %s3324_s3 = sshll.u32 %s3356_s17, 3  ;;  %2361 = vmatprep.subr.bf16.mxu0 %v2702_v13  ;;  %2369 = vmatprep.subr.bf16.mxu1 %v2702_v13  ;;  %s2707_s26 = smov [#allocation5]  }
  0x46   : > { %2363 = vmatprep.mubr.msk.bf16.mxu0 %vm2703_vm1, %v2702_v13  ;;  %2371 = vmatprep.mubr.msk.bf16.mxu1 %vm2703_vm1, %v2702_v13 }
  0x47   : > { %s2936_s2 = scalar_lea.vmem %s3341_s0, %s3324_s3  ;;  %s2704_s3 = smov 120  }
  0x48   : > { %v2939_v1 = vld [vmem:[%s2936_s2] sm:$0xff]  ;;  %v2942_v2 = vld [vmem:[%s2936_s2 + $0x8] sm:$0xff]  ;;  %2362 = vmatpush3.bf16.msra.mxu0 %v2563_v14  ;;  %2370 = vmatpush3.bf16.msra.mxu1 %v2564_v15  ;;  %s2706_s0 = smov 104  }
  0x49   : > { %v725_v3 = vsel %vm724_vm0, %v2939_v1, 0.0  ;;  %v743_v4 = vmul.f32 %v2939_v1, %v2939_v1  ;;  %v728_v5 = vsel %vm724_vm0, %v2942_v2, 0.0  ;;  %v744_v6 = vmul.f32 %v2942_v2, %v2942_v2  ;;  %v789_v9 = vld [vmem:[%s3342_s24] sm:$0xff]  ;;  %2375 = vmatprep.subr.bf16.mxu0 %v2702_v13  ;;  %2383 = vmatprep.subr.bf16.mxu1 %v2702_v13  ;;  %s3344_s24 = sshll.u32 %s3356_s17, 3 }
  0x4a   : > { %726 = vadd.xlane.f32.xlu0 %v725_v3  ;;  %v781_v10 = vld [vmem:[%s3343_s27] sm:$0xff] }
  0x4b   : > { %v745_v7 = vsel %vm724_vm0, %v743_v4, 0.0  ;;  %v748_v8 = vsel %vm724_vm0, %v744_v6, 0.0  ;;  %v2565_v6 = vld [vmem:[%s3306_s11 + $0x8] sm:$0xff]  }
  0x4c   : > { %746 = vadd.xlane.f32.xlu1 %v745_v7 }
  0x4e   : > { %729 = vadd.xlane.f32.xlu0 %v728_v5 }
  0x50   : > { %749 = vadd.xlane.f32.xlu1 %v748_v8  ;;  %v2270_v8 = vld [vmem:[%s3305_s10] ss:$0 sm:$0xff] }
  0x61   : > { %792 = vperm.xlu1 %2560, %v789_v9   ;;  %v2266_v9 = vld [vmem:[%s3303_s8] ss:$0 sm:$0xff] }
  0x64   : > { %784 = vperm.xlu0 %2559, %v781_v10  }
  0xd3   : > { %v727_v16 = vpop.xlane.xlu0 %726 }
  0xd4   : > { %v731_v17 = vrot.slane %v727_v16, 4 }
  0xd5   : > { %v747_v18 = vpop.xlane.xlu1 %746 }
  0xd6   : > { %v732_v19 = vadd.f32 %v731_v17, %v727_v16  ;;  %v751_v20 = vrot.slane %v747_v18, 4 }
  0xd7   : > { %v730_v21 = vpop.xlane.xlu0 %729 }
  0xd8   : > { %v733_v22 = vrot.slane %v732_v19, 2  ;;  %v752_v23 = vadd.f32 %v751_v20, %v747_v18  ;;  %v737_v24 = vrot.slane %v730_v21, 4 }
  0xd9   : > { %v750_v25 = vpop.xlane.xlu1 %749 }
  0xda   : > { %v734_v26 = vadd.f32 %v733_v22, %v732_v19  ;;  %v753_v27 = vrot.slane %v752_v23, 2  ;;  %v738_v28 = vadd.f32 %v737_v24, %v730_v21  ;;  %v757_v29 = vrot.slane %v750_v25, 4  ;;  %v2274_v24 = vld [vmem:[%s3307_s12] ss:$0 sm:$0xff] }
  0xdc   : > { %v735_v30 = vrot.slane %v734_v26, 1  ;;  %v754_v31 = vadd.f32 %v753_v27, %v752_v23  ;;  %v739_v32 = vrot.slane %v738_v28, 2  ;;  %v758_v33 = vadd.f32 %v757_v29, %v750_v25 }
  0xdd   : > { %v793_v0 = vpop.permute.xlu1 %792 }
  0xde   : > { %v736_v34 = vadd.f32 %v735_v30, %v734_v26  ;;  %v755_v35 = vrot.slane %v754_v31, 1  ;;  %v740_v36 = vadd.f32 %v739_v32, %v738_v28  ;;  %v759_v37 = vrot.slane %v758_v33, 2 }
  0xdf   : > { %v785_v59 = vpop.permute.xlu0 %784 }
  0xe0   : > { %v763_v38 = vmul.f32 0.00390625, %v736_v34  ;;  %v756_v39 = vadd.f32 %v755_v35, %v754_v31  ;;  %v741_v40 = vrot.slane %v740_v36, 1  ;;  %v760_v41 = vadd.f32 %v759_v37, %v758_v33 }
  0xe2   : > { %v767_v42 = vmul.f32 %v763_v38, %v763_v38  ;;  %v765_v43 = vmul.f32 0.00390625, %v756_v39  ;;  %v742_v44 = vadd.f32 %v741_v40, %v740_v36  ;;  %v761_v45 = vrot.slane %v760_v41, 1 }
  0xe3   : > { %v773_v56 = vsub.f32 %v2939_v1, %v763_v38 }
  0xe4   : > { %v769_v46 = vsub.f32 %v765_v43, %v767_v42  ;;  %v764_v47 = vmul.f32 0.00390625, %v742_v44  ;;  %v762_v48 = vadd.f32 %v761_v45, %v760_v41  ;;  %v3043_v42 = vld [vmem:[%s2921_s23] ss:$0 sm:$0xff] }
  0xe6   : > { %v771_v49 = vmax.f32 %v769_v46, 0.0  ;;  %v768_v50 = vmul.f32 %v764_v47, %v764_v47  ;;  %v766_v51 = vmul.f32 0.00390625, %v762_v48  ;;  %v774_v60 = vsub.f32 %v2942_v2, %v764_v47  ;;  %v2566_v2 = vld [vmem:[%s3306_s11] sm:$0xff]  }
  0xe7   : > { %v3047_v46 = vld [vmem:[%s2921_s23 + $0x1] ss:$0 sm:$0xff]  ;;  %s2705_s23 = smov 112  }
  0xe8   : > { %v775_v52 = vadd.f32 1e-05, %v771_v49  ;;  %v770_v53 = vsub.f32 %v766_v51, %v768_v50 }
  0xea   : > { %2567 = vrsqrt.f32 %v775_v52  ;;  %v772_v54 = vmax.f32 %v770_v53, 0.0 }
  0xec   : > { %v776_v55 = vadd.f32 1e-05, %v772_v54 }
  0xee   : > { %2569 = vrsqrt.f32 %v776_v55 }
  0xf7   : > { %v2568_v57 = vpop.eup %2567 }
  0xf8   : > { %v779_v58 = vmul.f32 %v2568_v57, %v773_v56 }
  0xfa   : > { %v787_v63 = vmul.f32 %v785_v59, %v779_v58 }
  0xfb   : > { %v2570_v61 = vpop.eup %2569 }
  0xfc   : > { %v780_v62 = vmul.f32 %v2570_v61, %v774_v60  ;;  %v795_v4 = vadd.f32 %v793_v0, %v787_v63 }
  0xfe   : > { %v788_v3 = vmul.f32 %v785_v59, %v780_v62 }
 0x100   : > { %v796_v5 = vadd.f32 %v793_v0, %v788_v3 }
 0x102   : > { %v797_v7 = vpack.c.bf16 %v796_v5, %v795_v4 }
 0x104   : > { %2364 = vmatmul.mubr.msk.bf16.vlgmr.msra.gmra.mxu0 %vm724_vm0, %v797_v7  ;;  %2372 = vmatmul.mubr.msk.bf16.vlgmr.msra.gmra.mxu1 %vm724_vm0, %v797_v7 }
 0x105   : > { %2376 = vmatpush3.bf16.msra.mxu0 %v2565_v6  ;;  %2379 = vmatprep.mubr.msk.bf16.mxu0 %vm2703_vm1, %v2702_v13 }
 0x106   : > { %2377 = vmatprep.subr.bf16.mxu0 %v2702_v13  ;;  %2385 = vmatprep.mubr.msk.bf16.mxu1 %vm2703_vm1, %v2702_v13 }
 0x109   : > { %2378 = vmatpush3.bf16.msra.mxu0 %v2566_v2 }
 0x10a   : > { %2389 = vmatprep.subr.bf16.mxu0 %v2702_v13 }
 0x10c   : > { %2380 = vmatmul.mubr.msk.bf16.vlgmr.msra.gmra.mxu0 %vm724_vm0, %v797_v7 }
 0x10d   : > { %2391 = vmatprep.mubr.msk.bf16.mxu0 %vm2703_vm1, %v2702_v13 }
 0x1c4   : > { %v858_v10 = vpop.f32.mrf.mxu0  ;;  %v924_v11 = vpop.f32.mrf.mxu1 }
 0x1c5   : > { %v925_v12 = vadd.f32 %v2270_v8, %v924_v11  ;;  %v859_v16 = vadd.f32 %v2266_v9, %v858_v10 }
 0x1c6   : > { %v2365_v14 = vpop.f32.mrf.mxu0  ;;  %v2373_v15 = vpop.f32.mrf.mxu1 }
 0x1c7   : > { %v3007_v17 = vpack.c.bf16 %v925_v12, %v925_v12  ;;  %v865_v25 = vmul.f32 0.35355338, %v859_v16 }
 0x1c8   : > { %v861_v18 = vpop.f32.mrf.mxu0  ;;  %v927_v19 = vpop.f32.mrf.mxu1 }
 0x1c9   : > { %v928_v20 = vadd.f32 %v2270_v8, %v927_v19  ;;  %v1024_v21 = vsel %vm1019_vm2, %v3007_v17, 0  ;;  %v862_v26 = vadd.f32 %v2266_v9, %v861_v18  ;;  %v3019_v32 = vpack.c.bf16 %v865_v25, %v865_v25 }
 0x1ca   : > { %v2366_v22 = vpop.f32.mrf.mxu0  ;;  %v2374_v23 = vpop.f32.mrf.mxu1  ;;  %2384 = vmatpush3.bf16.xpose.msra.mxu1 %v1024_v21 }
 0x1cb   : > { %v3014_v27 = vpack.c.bf16 %v928_v20, %v928_v20  ;;  %2395 = vmatprep.subr.bf16.mxu1 %v2702_v13  ;;  %v866_v33 = vmul.f32 0.35355338, %v862_v26 }
 0x1cc   : > { %v988_v28 = vpop.f32.mrf.mxu0 }
 0x1cd   : > { %v989_v29 = vadd.f32 %v2274_v24, %v988_v28  ;;  %v1070_v30 = vsel %vm1019_vm2, %v3014_v27, 0  ;;  %v3030_v39 = vpack.c.bf16 %v866_v33, %v866_v33 }
 0x1ce   : > { %v2381_v31 = vpop.f32.mrf.mxu0  ;;  %2390 = vmatpush3.bf16.xpose.msra.mxu0 %v1070_v30 }
 0x1cf   : > { %v3021_v34 = vpack.c.bf16 %v989_v29, %v989_v29  ;;  %2401 = vmatprep.subr.bf16.mxu0 %v2702_v13 }
 0x1d0   : > { %v991_v35 = vpop.f32.mrf.mxu0 }
 0x1d1   : > { %v992_v36 = vadd.f32 %v2274_v24, %v991_v35  ;;  %2386 = vmatmul.mubr.msk.bf16.vlgmr.msra.gmra.mxu1 %vm1019_vm2, %v3019_v32  ;;  %v1141_v37 = vsel %vm1139_vm3, %v3021_v34, 0 }
 0x1d2   : > { %v2382_v38 = vpop.f32.mrf.mxu0  ;;  %2396 = vmatpush3.bf16.msra.mxu1 %v1141_v37  ;;  %2397 = vmatprep.mubr.msk.bf16.mxu1 %vm2703_vm1, %v2702_v13 }
 0x1d3   : > { %v3032_v40 = vpack.c.bf16 %v992_v36, %v992_v36  ;;  %2407 = vmatprep.subr.bf16.mxu1 %v2702_v13 }
 0x1d5   : > { %2392 = vmatmul.mubr.msk.bf16.vlgmr.msra.gmra.mxu0 %vm1019_vm2, %v3030_v39  ;;  %v1187_v41 = vsel %vm1139_vm3, %v3032_v40, 0 }
 0x1d6   : > { %2402 = vmatpush3.bf16.msra.mxu0 %v1187_v41  ;;  %2403 = vmatprep.mubr.msk.bf16.mxu0 %vm2703_vm1, %v2702_v13 }
 0x1d7   : > { %2413 = vmatprep.subr.bf16.mxu0 %v2702_v13 }
 0x291   : > { %v1060_v43 = vpop.f32.mrf.mxu1 }
 0x292   : > { %v1061_v44 = vadd.f32 %v3043_v42, %v1060_v43 }
 0x293   : > { %v2387_v45 = vpop.f32.mrf.mxu1 }
 0x294   : > { %v1112_v47 = vsel %vm1019_vm2, %v1061_v44, -inf }
 0x295   : > { %1113 = vmax.xlane.f32.xlu1 %v1112_v47  ;;  %v1063_v48 = vpop.f32.mrf.mxu1  ;;  %v1106_v49 = vpop.f32.mrf.mxu0 }
 0x296   : > { %v1107_v50 = vadd.f32 %v3047_v46, %v1106_v49 }
 0x297   : > { %v2388_v51 = vpop.f32.mrf.mxu1  ;;  %v2393_v52 = vpop.f32.mrf.mxu0 }
 0x298   : > { %v1115_v53 = vsel %vm1019_vm2, %v1107_v50, -inf }
 0x299   : > { %1116 = vmax.xlane.f32.xlu0 %v1115_v53  ;;  %v1109_v54 = vpop.f32.mrf.mxu0 }
 0x29b   : > { %v2394_v55 = vpop.f32.mrf.mxu0 }
 0x2a6   : > { %1234 = vrot.lane.b32.xlu1 %v3007_v17, %s2704_s3 }
 0x2af   : > { %1286 = vrot.lane.b32.xlu0 %v3014_v27, %s2704_s3 }
 0x31e   : > { %v1114_v56 = vpop.xlane.xlu1 %1113 }
 0x31f   : > { %v1118_v57 = vsub.f32 %v1061_v44, %v1114_v56 }
 0x321   : > { %v1120_v58 = vmul.f32 1.442695, %v1118_v57 }
 0x322   : > { %v1117_v59 = vpop.xlane.xlu0 %1116  ;;  %v1235_v4 = vpop.permute.xlu1 %1234 }
 0x323   : > { %2571 = vpow2.f32 %v1120_v58  ;;  %v1119_v60 = vsub.f32 %v1107_v50, %v1117_v59  ;;  %v1240_v10 = vsel %vm1019_vm2, %v1235_v4, 0 }
 0x325   : > { %v1122_v61 = vmul.f32 1.442695, %v1119_v60 }
 0x326   : > { %v1287_v12 = vpop.permute.xlu0 %1286 }
 0x327   : > { %2573 = vpow2.f32 %v1122_v61  ;;  %v1292_v15 = vsel %vm1019_vm2, %v1287_v12, 0 }
 0x330   : > { %v2572_v62 = vpop.eup %2571 }
 0x331   : > { %v1124_v63 = vsel %vm1019_vm2, %v2572_v62, 0.0 }
 0x332   : > { %1125 = vadd.xlane.f32.xlu1 %v1124_v63 }
 0x334   : > { %v2574_v0 = vpop.eup %2573 }
 0x335   : > { %v1127_v3 = vsel %vm1019_vm2, %v2574_v0, 0.0 }
 0x336   : > { %1128 = vadd.xlane.f32.xlu1 %v1127_v3 }
 0x347   : > { %1231 = vrot.lane.b32.xlu1 %v3019_v32, %s2704_s3 }
 0x34b   : > { %1283 = vrot.lane.b32.xlu1 %v3030_v39, %s2704_s3 }
 0x3bb   : > { %v1126_v5 = vpop.xlane.xlu1 %1125 }
 0x3bc   : > { %2575 = vrcp.f32 %v1126_v5  ;;  %v999_v5 = vld [vmem:[%s3308_s13] sm:$0xf] }
 0x3bf   : > { %v1129_v6 = vpop.xlane.xlu1 %1128 }
 0x3c0   : > { %2577 = vrcp.f32 %v1129_v6 }
 0x3c3   : > { %v1232_v16 = vpop.permute.xlu1 %1231 }
 0x3c7   : > { %v1284_v18 = vpop.permute.xlu1 %1283 }
 0x3c9   : > { %v2576_v7 = vpop.eup %2575 }
 0x3ca   : > { %v1132_v2 = vmul.f32 %v2576_v7, %v2572_v62 }
 0x3cc   : > { %v1134_v8 = vpack.c.bf16 %v1132_v2, %v1132_v2  ;;  %v1508_v2 = vsel %vm1139_vm3, %v999_v5, 0 }
 0x3cd   : > { %v2578_v9 = vpop.eup %2577 }
 0x3ce   : > { %2398 = vmatmul.mubr.msk.bf16.vlgmr.msra.gmra.mxu1 %vm1019_vm2, %v1134_v8  ;;  %v1133_v11 = vmul.f32 %v2578_v9, %v2574_v0 }
 0x3cf   : > { %2408 = vmatpush3.bf16.xpose.msra.mxu1 %v1240_v10  ;;  %2409 = vmatprep.mubr.msk.bf16.mxu1 %vm2703_vm1, %v2702_v13 }
 0x3d0   : > { %v1135_v14 = vpack.c.bf16 %v1133_v11, %v1133_v11  ;;  %2419 = vmatprep.subr.bf16.mxu1 %v2702_v13  ;;  %v1000_v11 = vld [vmem:[%s3308_s13 + $0x4] sm:$0xf] }
 0x3d1   : > { %v1461_v12 = vsel %vm1139_vm3, %v1000_v11, 0 }
 0x3d2   : > { %2404 = vmatmul.mubr.msk.bf16.vlgmr.msra.gmra.mxu0 %vm1019_vm2, %v1135_v14 }
 0x3d3   : > { %2414 = vmatpush3.bf16.xpose.msra.mxu0 %v1292_v15  ;;  %2415 = vmatprep.mubr.msk.bf16.mxu0 %vm2703_vm1, %v2702_v13 }
 0x3d4   : > { %2425 = vmatprep.subr.bf16.mxu0 %v2702_v13 }
 0x3d6   : > { %2410 = vmatmul.mubr.msk.bf16.vlgmr.msra.gmra.mxu1 %vm1019_vm2, %v1232_v16 }
 0x3d7   : > { %2421 = vmatprep.mubr.msk.bf16.mxu1 %vm2703_vm1, %v2702_v13 }
 0x3da   : > { %2416 = vmatmul.mubr.msk.bf16.vlgmr.msra.gmra.mxu0 %vm1019_vm2, %v1284_v18 }
 0x3db   : > { %2427 = vmatprep.mubr.msk.bf16.mxu0 %vm2703_vm1, %v2702_v13 }
 0x48e   : > { %v3078_v19 = vpop.f32.mrf.mxu1 }
 0x490   : > { %v2399_v20 = vpop.f32.mrf.mxu1 }
 0x492   : > { %v1180_v21 = vpop.f32.mrf.mxu1  ;;  %v3080_v22 = vpop.f32.mrf.mxu0 }
 0x493   : > { %v1229_v23 = vpack.c.bf16 %v3080_v22, %v3078_v19 }
 0x494   : > { %v2400_v24 = vpop.f32.mrf.mxu1  ;;  %v2405_v25 = vpop.f32.mrf.mxu0 }
 0x496   : > { %v1226_v26 = vpop.f32.mrf.mxu0  ;;  %v1276_v28 = vpop.f32.mrf.mxu1 }
 0x497   : > { %v1277_v29 = vadd.f32 %v3043_v42, %v1276_v28 }
 0x498   : > { %v2406_v30 = vpop.f32.mrf.mxu0  ;;  %v2411_v31 = vpop.f32.mrf.mxu1 }
 0x499   : > { %v1334_v33 = vsel %vm1019_vm2, %v1277_v29, -inf }
 0x49a   : > { %1335 = vmax.xlane.f32.xlu1 %v1334_v33  ;;  %v1279_v35 = vpop.f32.mrf.mxu1  ;;  %v1328_v36 = vpop.f32.mrf.mxu0 }
 0x49b   : > { %v1329_v37 = vadd.f32 %v3047_v46, %v1328_v36 }
 0x49c   : > { %v2412_v38 = vpop.f32.mrf.mxu1  ;;  %v2417_v41 = vpop.f32.mrf.mxu0 }
 0x49d   : > { %v1337_v43 = vsel %vm1019_vm2, %v1329_v37, -inf }
 0x49e   : > { %1338 = vmax.xlane.f32.xlu0 %v1337_v43  ;;  %v1331_v44 = vpop.f32.mrf.mxu0 }
 0x4a0   : > { %v2418_v45 = vpop.f32.mrf.mxu0 }
 0x4b4   : > { %1359 = vrot.lane.b32.xlu0 %v3021_v34, %s2704_s3 }
 0x4b8   : > { %1603 = vrot.lane.b32.xlu0 %v3014_v27, %s2705_s23 }
 0x4bc   : > { %1601 = vrot.lane.b32.xlu0 %v3030_v39, %s2705_s23 }
 0x523   : > { %v1336_v47 = vpop.xlane.xlu1 %1335 }
 0x524   : > { %v1340_v48 = vsub.f32 %v1277_v29, %v1336_v47 }
 0x526   : > { %v1342_v49 = vmul.f32 1.442695, %v1340_v48 }
 0x527   : > { %v1339_v50 = vpop.xlane.xlu0 %1338 }
 0x528   : > { %2579 = vpow2.f32 %v1342_v49  ;;  %v1341_v51 = vsub.f32 %v1329_v37, %v1339_v50 }
 0x52a   : > { %v1344_v52 = vmul.f32 1.442695, %v1341_v51 }
 0x52b   : > { %v1360_v53 = vpop.permute.xlu0 %1359 }
 0x52c   : > { %2581 = vpow2.f32 %v1344_v52  ;;  %v1365_v54 = vsel %vm1139_vm3, %v1360_v53, 0 }
 0x52d   : > { %2420 = vmatpush3.bf16.msra.mxu1 %v1365_v54 }
 0x52e   : > { %2431 = vmatprep.subr.bf16.mxu1 %v2702_v13 }
 0x52f   : > { %v1604_v8 = vpop.permute.xlu0 %1603 }
 0x530   : > { %v1609_v9 = vsel %vm1019_vm2, %v1604_v8, 0 }
 0x533   : > { %v1602_v10 = vpop.permute.xlu0 %1601 }
 0x535   : > { %v2580_v55 = vpop.eup %2579 }
 0x536   : > { %v1346_v56 = vsel %vm1019_vm2, %v2580_v55, 0.0 }
 0x537   : > { %1347 = vadd.xlane.f32.xlu1 %v1346_v56 }
 0x539   : > { %v2582_v57 = vpop.eup %2581 }
 0x53a   : > { %v1349_v58 = vsel %vm1019_vm2, %v2582_v57, 0.0 }
 0x53b   : > { %1350 = vadd.xlane.f32.xlu1 %v1349_v58 }
 0x54c   : > { %1408 = vrot.lane.b32.xlu1 %v3032_v40, %s2704_s3  ;;  %s2309_s3 = sshll.u32 %s2841_s6, 8 }
 0x54d   : > { %s3249_s25 = scalar_lea.hbm %s3316_s21, %s2309_s3 }
 0x550   : > { %1553 = vrot.lane.b32.xlu1 %v3007_v17, %s2705_s23 }
 0x554   : > { %1551 = vrot.lane.b32.xlu1 %v3019_v32, %s2705_s23 }
 0x5c0   : > { %v1348_v59 = vpop.xlane.xlu1 %1347 }
 0x5c1   : > { %2583 = vrcp.f32 %v1348_v59 }
 0x5c4   : > { %v1351_v60 = vpop.xlane.xlu1 %1350 }
 0x5c5   : > { %2585 = vrcp.f32 %v1351_v60 }
 0x5c8   : > { %v1409_v61 = vpop.permute.xlu1 %1408 }
 0x5c9   : > { %v1414_v62 = vsel %vm1139_vm3, %v1409_v61, 0 }
 0x5ca   : > { %2426 = vmatpush3.bf16.msra.mxu0 %v1414_v62 }
 0x5cb   : > { %2437 = vmatprep.subr.bf16.mxu0 %v2702_v13 }
 0x5cc   : > { %v1554_v16 = vpop.permute.xlu1 %1553 }
 0x5ce   : > { %v2584_v63 = vpop.eup %2583 }
 0x5cf   : > { %v1354_v0 = vmul.f32 %v2584_v63, %v2580_v55 }
 0x5d0   : > { %v1552_v28 = vpop.permute.xlu1 %1551 }
 0x5d1   : > { %v1356_v3 = vpack.c.bf16 %v1354_v0, %v1354_v0 }
 0x5d2   : > { %v2586_v4 = vpop.eup %2585 }
 0x5d3   : > { %2422 = vmatmul.mubr.msk.bf16.vlgmr.msra.gmra.mxu1 %vm1019_vm2, %v1356_v3  ;;  %v1355_v6 = vmul.f32 %v2586_v4, %v2582_v57 }
 0x5d4   : > { %2433 = vmatprep.mubr.msk.bf16.mxu1 %vm2703_vm1, %v2702_v13  ;;  %2432 = vmatpush3.bf16.msra.mxu1 %v1461_v12  ;;  %v1001_v12 = vld [vmem:[%s3308_s13 + $0x8] sm:$0xf] }
 0x5d5   : > { %v1357_v7 = vpack.c.bf16 %v1355_v6, %v1355_v6  ;;  %2443 = vmatprep.subr.bf16.mxu1 %v2702_v13 }
 0x5d7   : > { %2428 = vmatmul.mubr.msk.bf16.vlgmr.msra.gmra.mxu0 %vm1019_vm2, %v1357_v7 }
 0x5d8   : > { %2438 = vmatpush3.bf16.msra.mxu0 %v1508_v2  ;;  %2439 = vmatprep.mubr.msk.bf16.mxu0 %vm2703_vm1, %v2702_v13 }
 0x5d9   : > { %2449 = vmatprep.subr.bf16.mxu0 %v2702_v13 }
 0x5df   : > { %2440 = vmatmul.mubr.msk.bf16.vlgmr.msra.gmra.mxu0 %vm1019_vm2, %v1229_v23  ;;  %v1559_v23 = vsel %vm1019_vm2, %v1554_v16, 0 }
 0x5e0   : > { %2450 = vmatpush3.bf16.xpose.msra.mxu0 %v1609_v9  ;;  %2451 = vmatprep.mubr.msk.bf16.mxu0 %vm2703_vm1, %v2702_v13 }
 0x5e1   : > { %2461 = vmatprep.subr.bf16.mxu0 %v2702_v13 }
 0x5e7   : > { %2452 = vmatmul.mubr.msk.bf16.vlgmr.msra.gmra.mxu0 %vm1019_vm2, %v1602_v10 }
 0x5e8   : > { %2463 = vmatprep.mubr.msk.bf16.mxu0 %vm2703_vm1, %v2702_v13 }
 0x693   : > { %v1401_v14 = vpop.f32.mrf.mxu1 }
 0x695   : > { %v2423_v15 = vpop.f32.mrf.mxu1 }
 0x697   : > { %v1404_v18 = vpop.f32.mrf.mxu1  ;;  %v1450_v19 = vpop.f32.mrf.mxu0 }
 0x698   : > { %v1456_v20 = vpack.c.bf16 %v1450_v19, %v1401_v14 }
 0x699   : > { %v2424_v21 = vpop.f32.mrf.mxu1  ;;  %v2429_v22 = vpop.f32.mrf.mxu0 }
 0x69a   : > { %2434 = vmatmul.mubr.msk.bf16.vlgmr.msra.gmra.mxu1 %vm1019_vm2, %v1456_v20 }
 0x69b   : > { %2444 = vmatpush3.bf16.xpose.msra.mxu1 %v1559_v23  ;;  %v1453_v24 = vpop.f32.mrf.mxu0  ;;  %2445 = vmatprep.mubr.msk.bf16.mxu1 %vm2703_vm1, %v2702_v13 }
 0x69c   : > { %2455 = vmatprep.subr.bf16.mxu1 %v2702_v13 }
 0x69d   : > { %v2430_v25 = vpop.f32.mrf.mxu0 }
 0x69f   : > { %v3138_v26 = vpop.f32.mrf.mxu0 }
 0x6a1   : > { %v2441_v29 = vpop.f32.mrf.mxu0 }
 0x6a2   : > { %2446 = vmatmul.mubr.msk.bf16.vlgmr.msra.gmra.mxu1 %vm1019_vm2, %v1552_v28 }
 0x6a3   : > { %v3141_v30 = vpop.f32.mrf.mxu0  ;;  %2457 = vmatprep.mubr.msk.bf16.mxu1 %vm2703_vm1, %v2702_v13 }
 0x6a5   : > { %v2442_v31 = vpop.f32.mrf.mxu0 }
 0x6a7   : > { %v1645_v33 = vpop.f32.mrf.mxu0 }
 0x6a8   : > { %v1646_v35 = vadd.f32 %v3047_v46, %v1645_v33 }
 0x6a9   : > { %v2453_v36 = vpop.f32.mrf.mxu0 }
 0x6aa   : > { %v1654_v37 = vsel %vm1019_vm2, %v1646_v35, -inf }
 0x6ab   : > { %1655 = vmax.xlane.f32.xlu0 %v1654_v37  ;;  %v1648_v38 = vpop.f32.mrf.mxu0 }
 0x6ad   : > { %v2454_v41 = vpop.f32.mrf.mxu0 }
 0x734   : > { %v1656_v43 = vpop.xlane.xlu0 %1655 }
 0x735   : > { %v1658_v44 = vsub.f32 %v1646_v35, %v1656_v43 }
 0x737   : > { %v1661_v45 = vmul.f32 1.442695, %v1658_v44 }
 0x739   : > { %2587 = vpow2.f32 %v1661_v45 }
 0x746   : > { %v2588_v55 = vpop.eup %2587 }
 0x747   : > { %v1666_v58 = vsel %vm1019_vm2, %v2588_v55, 0.0 }
 0x75a   : > { %v3147_v47 = vpop.f32.mrf.mxu1 }
 0x75b   : > { %v1545_v44 = vadd.f32 %v3138_v26, %v3147_v47 }
 0x75c   : > { %v2435_v48 = vpop.f32.mrf.mxu1 }
 0x75e   : > { %v3149_v49 = vpop.f32.mrf.mxu1 }
 0x760   : > { %v2436_v50 = vpop.f32.mrf.mxu1 }
 0x762   : > { %v1595_v51 = vpop.f32.mrf.mxu1 }
 0x763   : > { %v1596_v52 = vadd.f32 %v3043_v42, %v1595_v51  ;;  %v1548_v51 = vadd.f32 %v3141_v30, %v3149_v49 }
 0x764   : > { %v2447_v53 = vpop.f32.mrf.mxu1 }
 0x765   : > { %v1651_v54 = vsel %vm1019_vm2, %v1596_v52, -inf }
 0x766   : > { %1652 = vmax.xlane.f32.xlu1 %v1651_v54  ;;  %v1598_v56 = vpop.f32.mrf.mxu1 }
 0x768   : > { %v2448_v57 = vpop.f32.mrf.mxu1 }
 0x76a   : > { %1667 = vadd.xlane.f32.xlu1 %v1666_v58 }
 0x77b   : > { %1723 = vrot.lane.b32.xlu1 %v3032_v40, %s2705_s23 }
 0x77f   : > { %1823 = vrot.lane.b32.xlu1 %v3007_v17, %s2706_s0 }
 0x783   : > { %1821 = vrot.lane.b32.xlu1 %v3019_v32, %s2706_s0 }
 0x7ef   : > { %v1653_v59 = vpop.xlane.xlu1 %1652 }
 0x7f0   : > { %v1657_v60 = vsub.f32 %v1596_v52, %v1653_v59 }
 0x7f2   : > { %v1659_v61 = vmul.f32 1.442695, %v1657_v60 }
 0x7f3   : > { %v1668_v62 = vpop.xlane.xlu1 %1667 }
 0x7f4   : > { %2589 = vpow2.f32 %v1659_v61 }
 0x7f5   : > { %2591 = vrcp.f32 %v1668_v62 }
 0x7f7   : > { %v1724_v63 = vpop.permute.xlu1 %1723 }
 0x7f8   : > { %v1729_v0 = vsel %vm1139_vm3, %v1724_v63, 0 }
 0x7f9   : > { %2462 = vmatpush3.bf16.msra.mxu0 %v1729_v0 }
 0x7fa   : > { %2473 = vmatprep.subr.bf16.mxu0 %v2702_v13 }
 0x7fb   : > { %v1824_v6 = vpop.permute.xlu1 %1823 }
 0x7fc   : > { %v1829_v7 = vsel %vm1019_vm2, %v1824_v6, 0 }
 0x7ff   : > { %v1822_v2 = vpop.permute.xlu1 %1821 }
 0x801   : > { %v2590_v3 = vpop.eup %2589 }
 0x802   : > { %v2592_v4 = vpop.eup %2591  ;;  %v1663_v5 = vsel %vm1019_vm2, %v2590_v3, 0.0 }
 0x803   : > { %1664 = vadd.xlane.f32.xlu0 %v1663_v5  ;;  %v1672_v17 = vmul.f32 %v2592_v4, %v2588_v55 }
 0x805   : > { %v1674_v32 = vpack.c.bf16 %v1672_v17, %v1672_v17 }
 0x807   : > { %2464 = vmatmul.mubr.msk.bf16.vlgmr.msra.gmra.mxu0 %vm1019_vm2, %v1674_v32  ;;  %v1002_v32 = vld [vmem:[%s3308_s13 + $0xc] sm:$0xf] }
 0x808   : > { %2474 = vmatpush3.bf16.xpose.msra.mxu0 %v1829_v7  ;;  %2475 = vmatprep.mubr.msk.bf16.mxu0 %vm2703_vm1, %v2702_v13  ;;  %v2046_v7 = vsel %vm1139_vm3, %v1002_v32, 0 }
 0x809   : > { %2485 = vmatprep.subr.bf16.mxu0 %v2702_v13 }
 0x80f   : > { %2476 = vmatmul.mubr.msk.bf16.vlgmr.msra.gmra.mxu0 %vm1019_vm2, %v1822_v2 }
 0x810   : > { %2487 = vmatprep.mubr.msk.bf16.mxu0 %vm2703_vm1, %v2702_v13 }
 0x819   : > { %1675 = vrot.lane.b32.xlu0 %v3021_v34, %s2705_s23  ;;  %s3345_s23 = sld [smem:[#allocation14_spill]] }
 0x81d   : > { %1873 = vrot.lane.b32.xlu0 %v3014_v27, %s2706_s0  ;;  %v1776_v27 = vsel %vm1139_vm3, %v1001_v12, 0 }
 0x81f   : > { %s718_s5 = scalar_lea.vmem %s3345_s23, %s3344_s24  ;;  %s706_s23 = scalar_lea.vmem [#allocation5], %s2261_s22 }
 0x820   : > { %v2101_v30 = vld [vmem:[%s718_s5 + $0x8] sm:$0xff]  ;;  %v2100_v6 = vld [vmem:[%s718_s5] sm:$0xff]  ;;  %s2156_s5 = sshll.u32 %s706_s23, 4  ;;  %s3251_s5 = int_to_ptr.vmem [resolvable:$true] %s2156_s5 }
 0x821   : > { %1871 = vrot.lane.b32.xlu0 %v3030_v39, %s2706_s0  ;;  %s2632_s6 = scalar_lea.vmem %s3251_s5, 256 }
 0x822   : > { %p2633_p12 = scmp.ne.s32.totalorder %s3251_s5, %s2632_s6 }
 0x824   : > { %p2634_p4 = pnand %p2633_p12, %p3346_p13 }
 0x826   : > { %p2635_p5 = pneg %p2634_p4 }
 0x88c   : > { %v1665_v8 = vpop.xlane.xlu0 %1664 }
 0x88d   : > { %2593 = vrcp.f32 %v1665_v8 }
 0x890   : > { %v1676_v9 = vpop.permute.xlu0 %1675 }
 0x891   : > { %v1681_v10 = vsel %vm1139_vm3, %v1676_v9, 0 }
 0x892   : > { %2456 = vmatpush3.bf16.msra.mxu1 %v1681_v10 }
 0x893   : > { %2467 = vmatprep.subr.bf16.mxu1 %v2702_v13 }
 0x894   : > { %v1874_v28 = vpop.permute.xlu0 %1873 }
 0x895   : > { %v1879_v35 = vsel %vm1019_vm2, %v1874_v28, 0 }
 0x898   : > { %v1872_v37 = vpop.permute.xlu0 %1871 }
 0x89a   : > { %v2594_v11 = vpop.eup %2593 }
 0x89b   : > { %v1671_v14 = vmul.f32 %v2594_v11, %v2590_v3 }
 0x89d   : > { %v1673_v15 = vpack.c.bf16 %v1671_v14, %v1671_v14 }
 0x89f   : > { %2458 = vmatmul.mubr.msk.bf16.vlgmr.msra.gmra.mxu1 %vm1019_vm2, %v1673_v15 }
 0x8a0   : > { %2468 = vmatpush3.bf16.msra.mxu1 %v1776_v27  ;;  %2469 = vmatprep.mubr.msk.bf16.mxu1 %vm2703_vm1, %v2702_v13 }
 0x8a1   : > { %2479 = vmatprep.subr.bf16.mxu1 %v2702_v13 }
 0x8c7   : > { %v1765_v39 = vpop.f32.mrf.mxu0 }
 0x8c9   : > { %v2465_v16 = vpop.f32.mrf.mxu0 }
 0x8cb   : > { %v1768_v18 = vpop.f32.mrf.mxu0 }
 0x8cd   : > { %v2466_v19 = vpop.f32.mrf.mxu0 }
 0x8cf   : > { %v1865_v20 = vpop.f32.mrf.mxu0 }
 0x8d0   : > { %v1866_v21 = vadd.f32 %v3043_v42, %v1865_v20 }
 0x8d1   : > { %v2477_v22 = vpop.f32.mrf.mxu0 }
 0x8d2   : > { %v1921_v23 = vsel %vm1019_vm2, %v1866_v21, -inf }
 0x8d3   : > { %1922 = vmax.xlane.f32.xlu1 %v1921_v23  ;;  %v1868_v24 = vpop.f32.mrf.mxu0  ;;  %v2301_v23 = vld [vmem:[%s3314_s19] ss:$0 sm:$0xff] }
 0x8d5   : > { %v2478_v25 = vpop.f32.mrf.mxu0 }
 0x95c   : > { %v1923_v38 = vpop.xlane.xlu1 %1922 }
 0x95d   : > { %v1927_v41 = vsub.f32 %v1866_v21, %v1923_v38  ;;  %v2300_v21 = vld [vmem:[%s3309_s14] ss:$0 sm:$0xff] }
 0x95f   : > { %v1717_v29 = vpop.f32.mrf.mxu1  ;;  %v1929_v43 = vmul.f32 1.442695, %v1927_v41 }
 0x960   : > { %v1771_v31 = vpack.c.bf16 %v1765_v39, %v1717_v29 }
 0x961   : > { %v2459_v33 = vpop.f32.mrf.mxu1  ;;  %2595 = vpow2.f32 %v1929_v43 }
 0x962   : > { %2470 = vmatmul.mubr.msk.bf16.vlgmr.msra.gmra.mxu1 %vm1019_vm2, %v1771_v31 }
 0x963   : > { %2480 = vmatpush3.bf16.xpose.msra.mxu1 %v1879_v35  ;;  %v1720_v36 = vpop.f32.mrf.mxu1  ;;  %2481 = vmatprep.mubr.msk.bf16.mxu1 %vm2703_vm1, %v2702_v13  ;;  %v2302_v35 = vld [vmem:[%s3315_s20] ss:$0 sm:$0xff] }
 0x964   : > { %2491 = vmatprep.subr.bf16.mxu1 %v2702_v13 }
 0x965   : > { %v2460_v42 = vpop.f32.mrf.mxu1 }
 0x96a   : > { %2482 = vmatmul.mubr.msk.bf16.vlgmr.msra.gmra.mxu1 %vm1019_vm2, %v1872_v37 }
 0x96b   : > { %2493 = vmatprep.mubr.msk.bf16.mxu1 %vm2703_vm1, %v2702_v13 }
 0x96e   : > { %v2596_v26 = vpop.eup %2595 }
 0x96f   : > { %v1933_v60 = vsel %vm1019_vm2, %v2596_v26, 0.0 }
 0xa22   : > { %v1812_v45 = vpop.f32.mrf.mxu1 }
 0xa23   : > { %v3199_v48 = vadd.f32 %v1812_v45, %v1545_v44 }
 0xa24   : > { %v2471_v50 = vpop.f32.mrf.mxu1 }
 0xa26   : > { %v1815_v52 = vpop.f32.mrf.mxu1 }
 0xa27   : > { %v3203_v53 = vadd.f32 %v1815_v52, %v1548_v51 }
 0xa28   : > { %v2472_v54 = vpop.f32.mrf.mxu1 }
 0xa2a   : > { %v1915_v55 = vpop.f32.mrf.mxu1 }
 0xa2b   : > { %v1916_v56 = vadd.f32 %v3047_v46, %v1915_v55 }
 0xa2c   : > { %v2483_v57 = vpop.f32.mrf.mxu1 }
 0xa2d   : > { %v1924_v58 = vsel %vm1019_vm2, %v1916_v56, -inf }
 0xa2e   : > { %1925 = vmax.xlane.f32.xlu0 %v1924_v58  ;;  %v1918_v47 = vpop.f32.mrf.mxu1 }
 0xa30   : > { %v2484_v59 = vpop.f32.mrf.mxu1 }
 0xa32   : > { %1934 = vadd.xlane.f32.xlu0 %v1933_v60 }
 0xa48   : > { %1945 = vrot.lane.b32.xlu0 %v3021_v34, %s2706_s0 }
 0xa4c   : > { %2118 = vperm.xlu0 %2559, %v2101_v30  }
 0xab7   : > { %v1926_v46 = vpop.xlane.xlu0 %1925 }
 0xab8   : > { %v1928_v49 = vsub.f32 %v1916_v56, %v1926_v46 }
 0xaba   : > { %v1931_v61 = vmul.f32 1.442695, %v1928_v49 }
 0xabb   : > { %v1935_v62 = vpop.xlane.xlu0 %1934 }
 0xabc   : > { %2597 = vpow2.f32 %v1931_v61 }
 0xabd   : > { %2599 = vrcp.f32 %v1935_v62 }
 0xabf   : > { %v1946_v63 = vpop.permute.xlu0 %1945 }
 0xac0   : > { %v1951_v0 = vsel %vm1139_vm3, %v1946_v63, 0 }
 0xac1   : > { %2486 = vmatpush3.bf16.msra.mxu0 %v1951_v0 }
 0xac2   : > { %2497 = vmatprep.subr.bf16.mxu0 %v2702_v13 }
 0xac7   : > { %v2119_v43 = vpop.permute.xlu0 %2118 }
 0xac9   : > { %v2598_v3 = vpop.eup %2597 }
 0xaca   : > { %v2600_v4 = vpop.eup %2599  ;;  %v1936_v5 = vsel %vm1019_vm2, %v2598_v3, 0.0 }
 0xacb   : > { %1937 = vadd.xlane.f32.xlu1 %v1936_v5  ;;  %v1941_v34 = vmul.f32 %v2600_v4, %v2596_v26 }
 0xacd   : > { %v1943_v17 = vpack.c.bf16 %v1941_v34, %v1941_v34 }
 0xacf   : > { %2488 = vmatmul.mubr.msk.bf16.vlgmr.msra.gmra.mxu0 %vm1019_vm2, %v1943_v17 }
 0xad0   : > { %2499 = vmatprep.mubr.msk.bf16.mxu0 %vm2703_vm1, %v2702_v13  ;;  %2498 = vmatpush3.bf16.msra.mxu0 %v2046_v7 }
 0xadc   : > { %1993 = vrot.lane.b32.xlu1 %v3032_v40, %s2706_s0  ;;  %s2636_s0 = sshll.u32 %s2707_s26, 4  ;;  %s2637_s0 = int_to_ptr.vmem [resolvable:$false] %s2636_s0 }
 0xadd   : > { %s2638_s28 = scalar_lea.vmem %s2637_s0, 512  ;;  %p2639_p7 = scmp.lt.s32.totalorder %s3251_s5, %s2637_s0 }
 0xade   : > { %p2640_p8 = scmp.lt.s32.totalorder %s2638_s28, %s2632_s6 }
 0xae0   : > { %2113 = vperm.xlu1 %2560, %v2100_v6   ;;  %p2641_p10 = por %p2640_p8, %p2639_p7 }
 0xae2   : > { %p2642_p0 = pnand %p2641_p10, %p2635_p5 }
 0xb54   : > { %v1938_v2 = vpop.xlane.xlu1 %1937 }
 0xb55   : > { %2601 = vrcp.f32 %v1938_v2 }
 0xb58   : > { %v1994_v8 = vpop.permute.xlu1 %1993 }
 0xb59   : > { %v1999_v9 = vsel %vm1139_vm3, %v1994_v8, 0 }
 0xb5a   : > { %2492 = vmatpush3.bf16.msra.mxu1 %v1999_v9 }
 0xb5c   : > { %v2114_v33 = vpop.permute.xlu1 %2113 }
 0xb62   : > { %v2602_v10 = vpop.eup %2601 }
 0xb63   : > { %v1942_v13 = vmul.f32 %v2602_v10, %v2598_v3 }
 0xb65   : > { %v1944_v11 = vpack.c.bf16 %v1942_v13, %v1942_v13 }
 0xb67   : > { %2494 = vmatmul.mubr.msk.bf16.vlgmr.msra.gmra.mxu1 %vm1019_vm2, %v1944_v11 }
 0xb8f   : > { %v1987_v40 = vpop.f32.mrf.mxu0 }
 0xb91   : > { %v2489_v12 = vpop.f32.mrf.mxu0 }
 0xb93   : > { %v1990_v14 = vpop.f32.mrf.mxu0 }
 0xb95   : > { %v2490_v15 = vpop.f32.mrf.mxu0 }
 0xc27   : > { %v2035_v27 = vpop.f32.mrf.mxu1 }
 0xc28   : > { %v2041_v39 = vpack.c.bf16 %v2035_v27, %v1987_v40 }
 0xc29   : > { %v2495_v16 = vpop.f32.mrf.mxu1 }
 0xc2a   : > { %2500 = vmatmul.mubr.msk.bf16.vlgmr.msra.gmra.mxu0 %vm1019_vm2, %v2041_v39 }
 0xc2b   : > { %v2038_v18 = vpop.f32.mrf.mxu1 }
 0xc2d   : > { %v2496_v19 = vpop.f32.mrf.mxu1 }
 0xcea   : > { %v2082_v20 = vpop.f32.mrf.mxu0 }
 0xceb   : > { %v2089_v22 = vadd.f32 %v2082_v20, %v3199_v48 }
 0xcec   : > { %v2501_v24 = vpop.f32.mrf.mxu0 }
 0xced   : > { %v2098_v25 = vadd.f32 %v2300_v21, %v2089_v22 }
 0xcee   : > { %v2085_v28 = vpop.f32.mrf.mxu0 }
 0xcef   : > { %v2109_v29 = vmul.f32 %v2301_v23, %v2098_v25  ;;  %v2090_v31 = vadd.f32 %v2085_v28, %v3203_v53  ;;  %v2603_v53 = vld [vmem:[%s2936_s2 + $0x8] sm:$0xff]  ;;  %s2143_s2 = scalar_lea.sflag [#allocation4], %s2917_s4 }
 0xcf0   : > { %v2502_v36 = vpop.f32.mrf.mxu0 }
 0xcf1   : > { %v2121_v42 = vmul.f32 %v2114_v33, %v2109_v29  ;;  %v2099_v37 = vadd.f32 %v2300_v21, %v2090_v31 }
 0xcf3   : > { %v2132_v38 = vmul.f32 %v2302_v35, %v2121_v42  ;;  %v2110_v41 = vmul.f32 %v2301_v23, %v2099_v37  ;;  %v2123_v44 = vadd.f32 %v2121_v42, %v2939_v1 }
 0xcf5   : > { %v2134_v45 = vmul.f32 %v2132_v38, %v2114_v33  ;;  %v2122_v48 = vmul.f32 %v2119_v43, %v2110_v41 }
 0xcf7   : > { %v2136_v50 = vadd.f32 %v2134_v45, %v2123_v44  ;;  %v2133_v51 = vmul.f32 %v2302_v35, %v2122_v48  ;;  %v2124_v54 = vadd.f32 %v2603_v53, %v2122_v48 }
 0xcf9   : > { %v2138_v52 = vmul.f32 %v2136_v50, %v2114_v33  ;;  %v2135_v55 = vmul.f32 %v2133_v51, %v2119_v43 }
 0xcfb   : > { %v2137_v56 = vadd.f32 %v2135_v55, %v2124_v54  ;;  %2140 = vst.msk [vmem:[%s706_s23] sm:$0xff] %vm724_vm0, %v2138_v52 }
 0xcfd   : > { %v2139_v1 = vmul.f32 %v2137_v56, %v2119_v43 }
 0xcff   : > { %2141 = vst.msk [vmem:[%s706_s23 + $0x8] sm:$0xff] %vm724_vm0, %v2139_v1 }
 0xd00   : > { %2645 = shalt.err (!%p2642_p0)
}
 0xd01   : > { %s2646_s30 = scalar_lea.hbm %s3249_s25, 256  ;;  %s2650_s3 = scalar_lea.hbm %s3316_s21, 512 }
 0xd02   : > { %p2647_p2 = scmp.ne.s32.totalorder %s3249_s25, %s2646_s30  ;;  %p2651_p3 = scmp.lt.s32.totalorder %s3249_s25, %s3316_s21 }
 0xd03   : > { %p2652_p6 = scmp.lt.s32.totalorder %s2650_s3, %s2646_s30 }
 0xd04   : > { %p2648_p9 = pnand %p2647_p2, %p3346_p13 }
 0xd05   : > { %p2653_p11 = por %p2652_p6, %p2651_p3 }
 0xd06   : > { %p2649_p1 = pneg %p2648_p9 }
 0xd08   : > { %p2654_p12 = pnand %p2653_p11, %p2649_p1 }
 0xd0a   : > { %2657 = shalt.err (!%p2654_p12)
}
 0xd0b   : > { %s2708_s27 = smov 128   ;;  %s2709_s6 = smov 8  }
 0xd0c   : > { %2505 = dma.vmem_to_hbm [thread:$0]  (%p3346_p13), %s3251_s5, 256, %s3249_s25, %s2143_s2, %s2708_s27, %s2708_s27, %s2709_s6  }
 0xd0d PF: > { %s3347_s26 = sld [smem:[#allocation11_spill]]  ;;  %s2171_s0 = sand.u32 1, %s2684_s15  }
 0xd0e   : > { %p3349_p5 = scmp.ge.s32.totalorder %s2696_s18, 2  ;;  %s2172_s28 = scalar_lea.sflag [#allocation4], %s2171_s0 }
 0xd13   : > { %p3348_p4 = scmp.ne.s32.totalorder %s3347_s26, 0 }
 0xd15   : > { %p2512_p7 = pnand %p3349_p5, %p3348_p4 }
 0xd17   : > { %p2513_p8 = pneg %p2512_p7 }
 0xd19   : > { %2679 = dma.done.wait (%p2513_p8), %s2172_s28, 256  }
 0xd1a   : > { %2681 = vsyncadd (%p2513_p8), %s2172_s28, 4294967040  ;;  %s3350_s18 = sld [smem:[#allocation9_spill]]  ;;  %s3353_s15 = smov %s2688_s16 }
 0xd1b   : > { %s3351_s30 = sld [smem:[#allocation8_spill]] }
 0xd1c   : > { %s3352_s17 = sld [smem:[#allocation10_spill]] }
 0xd20   : > { %p34_p10 = scmp.ge.s32.totalorder %s3350_s18, 4  }
 0xd21   : > { %s3354_s16 = smov %s3351_s30 }
 0xd22   :  { %36 = sbr.rel (!%p34_p10) target bundleno = 11 (0xb), region = 155 }
 0xd27   :  { %2177 = vsyncpa [#allocation3], 1 }
 0xd28   :  { %2179 = vsyncpa [#allocation3 + $0x1], 1 }
 0xd29   :  { %2180 = vsyncpa [#allocation4], 1 }
 0xd2a   :  { %2182 = vsyncpa [#allocation4 + $0x1], 1 }

</bundles_post_ra>
